<compile_context>
chip_gen: v5e
topology: v5e:2x2
jax: 0.10.0
libtpu: 0.0.40
codegen_flags: <defaults>
</compile_context>

<pallas_src>
import functools
import math

import jax
import jax.numpy as jnp
import numpy as np
from jax.experimental import pallas as pl
from jax.experimental.pallas import tpu as pltpu

SQRT_HALF = math.sqrt(0.5)


# ------------------------------- fused kernel --------------------------------


def _wavenet_fused_kernel(*refs, plan, T0, PAD, C):
    """One batch element, all layers.

    refs = (x_ref, *param_refs, out_ref, hbuf_ref)
      x_ref    : (1, T0, C)      channels-last input block
      params   : per gated layer (wc (C,3G), bc (1,G), w1 (G/2,C), b1 (1,C));
                 final 1x1 (wf (C,Cout), bf (1,Cout)).  Scales pre-folded.
      out_ref  : (1, T_final, Cout)
      hbuf_ref : (PAD + T0 + PAD, C) f32 VMEM scratch; rows outside the current
                 valid region [PAD, PAD+Tc) are kept at zero (= conv zero padding).
    """
    x_ref = refs[0]
    out_ref = refs[-2]
    hbuf = refs[-1]
    params = refs[1:-2]

    # Zero the padded buffer, then drop the input into the 8-aligned valid region.
    hbuf[...] = jnp.zeros(hbuf.shape, jnp.float32)
    hbuf[PAD:PAD + T0, :] = x_ref[0].astype(jnp.float32)

    idx = 0
    Tc = T0
    wrote_output = False
    for layer in plan:                       # statically unrolled at trace time
        if layer["kind"] == "final":
            wf, bf = params[idx], params[idx + 1]
            idx += 2
            h = hbuf[PAD:PAD + Tc, :]
            out = jnp.dot(h, wf[...], preferred_element_type=jnp.float32) + bf[...]
            out_ref[0] = out.astype(out_ref.dtype)
            wrote_output = True
            continue

        wc, bc, w1, b1 = params[idx:idx + 4]
        idx += 4
        d = layer["d"]
        stride = 2 if layer["kind"] == "down" else 1
        Tout = Tc // stride
        G = bc.shape[-1]

        # Per-tap activations straight from the zero-padded scratch buffer:
        # tap k needs x[stride*j + (k-1)*d]  ->  hbuf row PAD + (k-1)*d + stride*j.
        taps = []
        for k in range(3):
            start = PAD + (k - 1) * d
            if stride == 1:
                taps.append(hbuf[start:start + Tout, :])
            else:
                taps.append(hbuf[pl.ds(start, Tout, stride=stride), :])

        y = bc[...]
        for k in range(3):
            y = y + jnp.dot(taps[k], wc[:, k * G:(k + 1) * G],
                            preferred_element_type=jnp.float32)
        half = G // 2
        g = jnp.tanh(y[:, :half]) * jax.nn.sigmoid(y[:, half:])

        out = jnp.dot(g, w1[...], preferred_element_type=jnp.float32) + b1[...]
        if layer["kind"] == "res":
            out = out + taps[1] * jnp.float32(SQRT_HALF)     # residual = middle tap

        hbuf[PAD:PAD + Tout, :] = out
        if stride == 2:
            # Restore the invariant: rows outside [PAD, PAD+Tout) stay zero.
            hbuf[PAD + Tout:PAD + Tc, :] = jnp.zeros((Tc - Tout, C), jnp.float32)
        Tc = Tout

    if not wrote_output:                      # resid_channels == out_channels case
        out_ref[0] = hbuf[PAD:PAD + Tc, :].astype(out_ref.dtype)


# --------------------------------- wrapper ------------------------------------


def wavenet_block_forward(x, kernel_params):
    """x: (B, resid_channels, T) NCW  ->  (B, out_channels, T // 4)."""
    B, C, T0 = x.shape
    h = jnp.transpose(x, (0, 2, 1))          # NCW -> NTC once at entry

    plan, flat = [], []
    Tc, C_out, max_d = T0, C, 1
    for layer in kernel_params:
        if layer["type"] == "res":
            plan.append(dict(kind="res", d=int(layer["dilation"])))
            max_d = max(max_d, int(layer["dilation"]))
            flat += [layer["w_conv"], layer["b_conv"], layer["w_1x1"], layer["b_1x1"]]
        elif layer["type"] == "down":
            assert Tc % 2 == 0, "DownConvLayer expects even time length"
            plan.append(dict(kind="down", d=1))
            flat += [layer["w_conv"], layer["b_conv"], layer["w_1x1"], layer["b_1x1"]]
            Tc //= 2
        else:
            plan.append(dict(kind="final"))
            flat += [layer["w"], layer["b"]]
            C_out = layer["w"].shape[-1]
    T_final = Tc
    PAD = max(8, ((max_d + 7) // 8) * 8)     # 8-row-aligned zero halo >= max dilation

    kernel = functools.partial(_wavenet_fused_kernel, plan=plan, T0=T0, PAD=PAD, C=C)

    out = pl.pallas_call(
        kernel,
        out_shape=jax.ShapeDtypeStruct((B, T_final, C_out), x.dtype),
        grid=(B,),
        in_specs=[pl.BlockSpec((1, T0, C), lambda b: (b, 0, 0))]
        + [pl.BlockSpec(p.shape, lambda b: (0, 0)) for p in flat],   # all params 2D
        out_specs=pl.BlockSpec((1, T_final, C_out), lambda b: (b, 0, 0)),
        scratch_shapes=[pltpu.VMEM((PAD + T0 + PAD, C), jnp.float32)],
        compiler_params=pltpu.CompilerParams(dimension_semantics=("parallel",)),
    )(h, *flat)

    return jnp.transpose(out, (0, 2, 1))     # back to NCW once at exit


# ------------------------- parameter init / prepping --------------------------


def init_wavenet_params(key, resid_channels, out_channels, n_layers, dilation_factor=2):
    """Raw parameters in PyTorch layout (conv weights (O, I, K))."""
    gate_channels = resid_channels * 2
    half = gate_channels // 2

    def gated(key):
        k1, k2, k3, k4 = jax.random.split(key, 4)
        return {
            "w_conv": jax.random.normal(k1, (gate_channels, resid_channels, 3), jnp.float32),
            "b_conv": jax.random.normal(k2, (gate_channels,), jnp.float32) * 0.1,
            "w_1x1": jax.random.normal(k3, (resid_channels, half, 1), jnp.float32) * 0.3,
            "b_1x1": jax.random.normal(k4, (resid_channels,), jnp.float32) * 0.1,
        }

    layers = []
    for i in range(n_layers):
        dilation = dilation_factor ** i
        key, sub = jax.random.split(key)
        layers.append(dict(type="res", dilation=dilation, **gated(sub)))
        if i == 0:
            key, s1, s2, s3 = jax.random.split(key, 4)
            layers.append(dict(type="down", **gated(s1)))
            layers.append(dict(type="res", dilation=dilation, **gated(s2)))
            layers.append(dict(type="down", **gated(s3)))
    if resid_channels != out_channels:
        key, s = jax.random.split(key)
        k1, k2 = jax.random.split(s)
        layers.append(dict(
            type="final1x1",
            w=jax.random.normal(k1, (out_channels, resid_channels, 1), jnp.float32) * 0.3,
            b=jax.random.normal(k2, (out_channels,), jnp.float32) * 0.1,
        ))
    return layers


def prep_kernel_params(raw_layers):
    """Fold EqualConv scale + sqrt(0.5), transpose to channels-last, concat taps."""
    s = jnp.float32(SQRT_HALF)
    prepped = []
    for layer in raw_layers:
        if layer["type"] in ("res", "down"):
            w = layer["w_conv"]                                   # (G, Cin, 3)
            G, Cin, K = w.shape
            eq = 1.0 / math.sqrt(Cin * K)
            taps = [jnp.transpose(w[:, :, k] * eq, (1, 0)) for k in range(K)]  # (Cin, G)
            wc = jnp.concatenate(taps, axis=1)                    # (Cin, 3G) = [W0|W1|W2]
            bc = layer["b_conv"].reshape(1, G)
            w1 = jnp.transpose(layer["w_1x1"][:, :, 0], (1, 0)) * s            # (G/2, Cres)
            b1 = (layer["b_1x1"] * s).reshape(1, -1)
            entry = dict(type=layer["type"], w_conv=wc, b_conv=bc, w_1x1=w1, b_1x1=b1)
            if layer["type"] == "res":
                entry["dilation"] = layer["dilation"]
            prepped.append(entry)
        else:
            wf = jnp.transpose(layer["w"][:, :, 0], (1, 0))       # (Cres, Cout)
            bf = layer["b"].reshape(1, -1)
            prepped.append(dict(type="final1x1", w=wf, b=bf))
    return prepped


# ------------------------------ pure-JAX reference ----------------------------


def _equal_conv1d_ref(x, w, b, stride, padding, dilation):
    scale = 1.0 / math.sqrt(w.shape[1] * w.shape[2])
    y = jax.lax.conv_general_dilated(
        x, w * scale, window_strides=(stride,), padding=[(padding, padding)],
        rhs_dilation=(dilation,), dimension_numbers=("NCH", "OIH", "NCH"))
    return y + b[None, :, None]


def _conv1x1_ref(x, w, b):
    y = jax.lax.conv_general_dilated(
        x, w, window_strides=(1,), padding=[(0, 0)],
        dimension_numbers=("NCH", "OIH", "NCH"))
    return y + b[None, :, None]


def wavenet_block_reference(x, raw_layers):
    s = jnp.float32(SQRT_HALF)
    h = x
    for layer in raw_layers:
        if layer["type"] == "res":
            d = layer["dilation"]
            y = _equal_conv1d_ref(h, layer["w_conv"], layer["b_conv"], 1, d, d)
            half = y.shape[1] // 2
            g = jnp.tanh(y[:, :half]) * jax.nn.sigmoid(y[:, half:])
            h = (_conv1x1_ref(g, layer["w_1x1"], layer["b_1x1"]) + h) * s
        elif layer["type"] == "down":
            y = _equal_conv1d_ref(h, layer["w_conv"], layer["b_conv"], 2, 1, 1)
            half = y.shape[1] // 2
            g = jnp.tanh(y[:, :half]) * jax.nn.sigmoid(y[:, half:])
            h = _conv1x1_ref(g, layer["w_1x1"], layer["b_1x1"]) * s
        else:
            h = _conv1x1_ref(h, layer["w"], layer["b"])
    return h


# ------------------------------------ test ------------------------------------


if __name__ == "__main__":
    resid_channels = 8
    out_channels = 16      # != resid_channels -> exercises the final Conv1d1x1 too
    n_layers = 3
    B, T = 2, 32

    key = jax.random.PRNGKey(0)
    key, xk = jax.random.split(key)
    x = jax.random.normal(xk, (B, resid_channels, T), dtype=jnp.float32)

    raw_params = init_wavenet_params(key, resid_channels, out_channels, n_layers)
    kernel_params = prep_kernel_params(raw_params)

    out = wavenet_block_forward(x, kernel_params)
    out = jax.block_until_ready(out)

    ref = wavenet_block_reference(x, raw_params)
    ref = jax.block_until_ready(ref)

    assert out.shape == (B, out_channels, T // 4), out.shape
    np.testing.assert_allclose(np.asarray(out), np.asarray(ref), rtol=1e-4, atol=1e-4)
    print("KERNEL_OK")
</pallas_src>

<mosaic_0001>
module attributes {stable_mosaic.version = 11 : i64} {
  func.func @_wavenet_fused_kernel(%arg0: i32, %arg1: memref<1x32x8xf32, #tpu.memory_space<vmem>>, %arg2: memref<8x48xf32, #tpu.memory_space<vmem>>, %arg3: memref<1x16xf32, #tpu.memory_space<vmem>>, %arg4: memref<8x8xf32, #tpu.memory_space<vmem>>, %arg5: memref<1x8xf32, #tpu.memory_space<vmem>>, %arg6: memref<8x48xf32, #tpu.memory_space<vmem>>, %arg7: memref<1x16xf32, #tpu.memory_space<vmem>>, %arg8: memref<8x8xf32, #tpu.memory_space<vmem>>, %arg9: memref<1x8xf32, #tpu.memory_space<vmem>>, %arg10: memref<8x48xf32, #tpu.memory_space<vmem>>, %arg11: memref<1x16xf32, #tpu.memory_space<vmem>>, %arg12: memref<8x8xf32, #tpu.memory_space<vmem>>, %arg13: memref<1x8xf32, #tpu.memory_space<vmem>>, %arg14: memref<8x48xf32, #tpu.memory_space<vmem>>, %arg15: memref<1x16xf32, #tpu.memory_space<vmem>>, %arg16: memref<8x8xf32, #tpu.memory_space<vmem>>, %arg17: memref<1x8xf32, #tpu.memory_space<vmem>>, %arg18: memref<8x48xf32, #tpu.memory_space<vmem>>, %arg19: memref<1x16xf32, #tpu.memory_space<vmem>>, %arg20: memref<8x8xf32, #tpu.memory_space<vmem>>, %arg21: memref<1x8xf32, #tpu.memory_space<vmem>>, %arg22: memref<8x48xf32, #tpu.memory_space<vmem>>, %arg23: memref<1x16xf32, #tpu.memory_space<vmem>>, %arg24: memref<8x8xf32, #tpu.memory_space<vmem>>, %arg25: memref<1x8xf32, #tpu.memory_space<vmem>>, %arg26: memref<8x16xf32, #tpu.memory_space<vmem>>, %arg27: memref<1x16xf32, #tpu.memory_space<vmem>>, %arg28: memref<1x8x16xf32, #tpu.memory_space<vmem>>, %arg29: memref<48x8xf32, #tpu.memory_space<vmem>>) attributes {dimension_semantics = [#tpu.dimension_semantics<parallel>], iteration_bounds = array<i64: 2>, scalar_prefetch = 0 : i64, scratch_operands = 1 : i64, tpu.core_type = #tpu.core_type<tc>, window_params = [{transform_indices = @transform_0, window_bounds = array<i64: 1, 32, 8>}, {pipeline_mode = #tpu.pipeline_mode<synchronous>, transform_indices = @transform_1, window_bounds = array<i64: 8, 48>}, {pipeline_mode = #tpu.pipeline_mode<synchronous>, transform_indices = @transform_2, window_bounds = array<i64: 1, 16>}, {pipeline_mode = #tpu.pipeline_mode<synchronous>, transform_indices = @transform_3, window_bounds = array<i64: 8, 8>}, {pipeline_mode = #tpu.pipeline_mode<synchronous>, transform_indices = @transform_4, window_bounds = array<i64: 1, 8>}, {pipeline_mode = #tpu.pipeline_mode<synchronous>, transform_indices = @transform_5, window_bounds = array<i64: 8, 48>}, {pipeline_mode = #tpu.pipeline_mode<synchronous>, transform_indices = @transform_6, window_bounds = array<i64: 1, 16>}, {pipeline_mode = #tpu.pipeline_mode<synchronous>, transform_indices = @transform_7, window_bounds = array<i64: 8, 8>}, {pipeline_mode = #tpu.pipeline_mode<synchronous>, transform_indices = @transform_8, window_bounds = array<i64: 1, 8>}, {pipeline_mode = #tpu.pipeline_mode<synchronous>, transform_indices = @transform_9, window_bounds = array<i64: 8, 48>}, {pipeline_mode = #tpu.pipeline_mode<synchronous>, transform_indices = @transform_10, window_bounds = array<i64: 1, 16>}, {pipeline_mode = #tpu.pipeline_mode<synchronous>, transform_indices = @transform_11, window_bounds = array<i64: 8, 8>}, {pipeline_mode = #tpu.pipeline_mode<synchronous>, transform_indices = @transform_12, window_bounds = array<i64: 1, 8>}, {pipeline_mode = #tpu.pipeline_mode<synchronous>, transform_indices = @transform_13, window_bounds = array<i64: 8, 48>}, {pipeline_mode = #tpu.pipeline_mode<synchronous>, transform_indices = @transform_14, window_bounds = array<i64: 1, 16>}, {pipeline_mode = #tpu.pipeline_mode<synchronous>, transform_indices = @transform_15, window_bounds = array<i64: 8, 8>}, {pipeline_mode = #tpu.pipeline_mode<synchronous>, transform_indices = @transform_16, window_bounds = array<i64: 1, 8>}, {pipeline_mode = #tpu.pipeline_mode<synchronous>, transform_indices = @transform_17, window_bounds = array<i64: 8, 48>}, {pipeline_mode = #tpu.pipeline_mode<synchronous>, transform_indices = @transform_18, window_bounds = array<i64: 1, 16>}, {pipeline_mode = #tpu.pipeline_mode<synchronous>, transform_indices = @transform_19, window_bounds = array<i64: 8, 8>}, {pipeline_mode = #tpu.pipeline_mode<synchronous>, transform_indices = @transform_20, window_bounds = array<i64: 1, 8>}, {pipeline_mode = #tpu.pipeline_mode<synchronous>, transform_indices = @transform_21, window_bounds = array<i64: 8, 48>}, {pipeline_mode = #tpu.pipeline_mode<synchronous>, transform_indices = @transform_22, window_bounds = array<i64: 1, 16>}, {pipeline_mode = #tpu.pipeline_mode<synchronous>, transform_indices = @transform_23, window_bounds = array<i64: 8, 8>}, {pipeline_mode = #tpu.pipeline_mode<synchronous>, transform_indices = @transform_24, window_bounds = array<i64: 1, 8>}, {pipeline_mode = #tpu.pipeline_mode<synchronous>, transform_indices = @transform_25, window_bounds = array<i64: 8, 16>}, {pipeline_mode = #tpu.pipeline_mode<synchronous>, transform_indices = @transform_26, window_bounds = array<i64: 1, 16>}, {transform_indices = @transform_27, window_bounds = array<i64: 1, 8, 16>}]} {
    %cst = arith.constant 0.000000e+00 : f32
    %0 = vector.broadcast %cst : f32 to vector<48x8xf32>
    %c0 = arith.constant 0 : index
    %c0_0 = arith.constant 0 : index
    %1 = vector.load %arg29[%c0, %c0_0] : memref<48x8xf32, #tpu.memory_space<vmem>>, vector<48x8xf32>
    tpu.vector_store %arg29[%c0, %c0_0], %0 {strides = array<i32>} : memref<48x8xf32, #tpu.memory_space<vmem>>, vector<48x8xf32>,
    %c0_1 = arith.constant 0 : index
    %c0_2 = arith.constant 0 : index
    %c0_3 = arith.constant 0 : index
    %2 = vector.load %arg1[%c0_1, %c0_2, %c0_3] : memref<1x32x8xf32, #tpu.memory_space<vmem>>, vector<1x32x8xf32>
    %3 = vector.shape_cast %2 : vector<1x32x8xf32> to vector<32x8xf32>
    %c8 = arith.constant 8 : index
    %c0_4 = arith.constant 0 : index
    %4 = vector.load %arg29[%c8, %c0_4] : memref<48x8xf32, #tpu.memory_space<vmem>>, vector<32x8xf32>
    tpu.vector_store %arg29[%c8, %c0_4], %3 {strides = array<i32>} : memref<48x8xf32, #tpu.memory_space<vmem>>, vector<32x8xf32>,
    %c7 = arith.constant 7 : index
    %c0_5 = arith.constant 0 : index
    %5 = vector.load %arg29[%c7, %c0_5] : memref<48x8xf32, #tpu.memory_space<vmem>>, vector<32x8xf32>
    %c8_6 = arith.constant 8 : index
    %c0_7 = arith.constant 0 : index
    %6 = vector.load %arg29[%c8_6, %c0_7] : memref<48x8xf32, #tpu.memory_space<vmem>>, vector<32x8xf32>
    %c9 = arith.constant 9 : index
    %c0_8 = arith.constant 0 : index
    %7 = vector.load %arg29[%c9, %c0_8] : memref<48x8xf32, #tpu.memory_space<vmem>>, vector<32x8xf32>
    %c0_9 = arith.constant 0 : index
    %c0_10 = arith.constant 0 : index
    %8 = vector.load %arg3[%c0_9, %c0_10] : memref<1x16xf32, #tpu.memory_space<vmem>>, vector<1x16xf32>
    %c0_11 = arith.constant 0 : index
    %c0_12 = arith.constant 0 : index
    %9 = vector.load %arg2[%c0_11, %c0_12] : memref<8x48xf32, #tpu.memory_space<vmem>>, vector<8x16xf32>
    %cst_13 = arith.constant dense<0.000000e+00> : vector<32x16xf32>
    %10 = tpu.matmul %5, %9, %cst_13 {dimension_numbers = #tpu.dot_dimension_numbers<[1], [0], [0], [1], [0, 0, 1, 1], [], []>} : vector<32x8xf32>, vector<8x16xf32>, vector<32x16xf32> -> vector<32x16xf32>
    %11 = vector.broadcast %8 : vector<1x16xf32> to vector<32x16xf32>
    %12 = arith.addf %11, %10 : vector<32x16xf32>
    %c0_14 = arith.constant 0 : index
    %c16 = arith.constant 16 : index
    %13 = vector.load %arg2[%c0_14, %c16] : memref<8x48xf32, #tpu.memory_space<vmem>>, vector<8x16xf32>
    %cst_15 = arith.constant dense<0.000000e+00> : vector<32x16xf32>
    %14 = tpu.matmul %6, %13, %cst_15 {dimension_numbers = #tpu.dot_dimension_numbers<[1], [0], [0], [1], [0, 0, 1, 1], [], []>} : vector<32x8xf32>, vector<8x16xf32>, vector<32x16xf32> -> vector<32x16xf32>
    %15 = arith.addf %12, %14 : vector<32x16xf32>
    %c0_16 = arith.constant 0 : index
    %c32 = arith.constant 32 : index
    %16 = vector.load %arg2[%c0_16, %c32] : memref<8x48xf32, #tpu.memory_space<vmem>>, vector<8x16xf32>
    %cst_17 = arith.constant dense<0.000000e+00> : vector<32x16xf32>
    %17 = tpu.matmul %7, %16, %cst_17 {dimension_numbers = #tpu.dot_dimension_numbers<[1], [0], [0], [1], [0, 0, 1, 1], [], []>} : vector<32x8xf32>, vector<8x16xf32>, vector<32x16xf32> -> vector<32x16xf32>
    %18 = arith.addf %15, %17 : vector<32x16xf32>
    %19 = vector.extract_strided_slice %18 {offsets = [0, 0], sizes = [32, 8], strides = [1, 1]} : vector<32x16xf32> to vector<32x8xf32>
    %20 = math.tanh %19 : vector<32x8xf32>
    %21 = vector.extract_strided_slice %18 {offsets = [0, 8], sizes = [32, 8], strides = [1, 1]} : vector<32x16xf32> to vector<32x8xf32>
    %22 = arith.negf %21 : vector<32x8xf32>
    %23 = math.exp %22 : vector<32x8xf32>
    %cst_18 = arith.constant 1.000000e+00 : f32
    %24 = vector.broadcast %cst_18 : f32 to vector<32x8xf32>
    %25 = arith.addf %24, %23 : vector<32x8xf32>
    %26 = arith.divf %24, %25 : vector<32x8xf32>
    %27 = arith.mulf %20, %26 : vector<32x8xf32>
    %c0_19 = arith.constant 0 : index
    %c0_20 = arith.constant 0 : index
    %28 = vector.load %arg4[%c0_19, %c0_20] : memref<8x8xf32, #tpu.memory_space<vmem>>, vector<8x8xf32>
    %cst_21 = arith.constant dense<0.000000e+00> : vector<32x8xf32>
    %29 = tpu.matmul %27, %28, %cst_21 {dimension_numbers = #tpu.dot_dimension_numbers<[1], [0], [0], [1], [0, 0, 1, 1], [], []>} : vector<32x8xf32>, vector<8x8xf32>, vector<32x8xf32> -> vector<32x8xf32>
    %c0_22 = arith.constant 0 : index
    %c0_23 = arith.constant 0 : index
    %30 = vector.load %arg5[%c0_22, %c0_23] : memref<1x8xf32, #tpu.memory_space<vmem>>, vector<1x8xf32>
    %31 = vector.broadcast %30 : vector<1x8xf32> to vector<32x8xf32>
    %32 = arith.addf %29, %31 : vector<32x8xf32>
    %cst_24 = arith.constant 0.707106769 : f32
    %33 = vector.broadcast %cst_24 : f32 to vector<32x8xf32>
    %34 = arith.mulf %6, %33 : vector<32x8xf32>
    %35 = arith.addf %32, %34 : vector<32x8xf32>
    %c8_25 = arith.constant 8 : index
    %c0_26 = arith.constant 0 : index
    %36 = vector.load %arg29[%c8_25, %c0_26] : memref<48x8xf32, #tpu.memory_space<vmem>>, vector<32x8xf32>
    tpu.vector_store %arg29[%c8_25, %c0_26], %35 {strides = array<i32>} : memref<48x8xf32, #tpu.memory_space<vmem>>, vector<32x8xf32>,
    %c7_27 = arith.constant 7 : index
    %c0_28 = arith.constant 0 : index
    %37 = tpu.strided_load %arg29[%c7_27, %c0_28] {strides = array<i32: 2, 1>} : memref<48x8xf32, #tpu.memory_space<vmem>>, vector<16x8xf32>
    %c8_29 = arith.constant 8 : index
    %c0_30 = arith.constant 0 : index
    %38 = tpu.strided_load %arg29[%c8_29, %c0_30] {strides = array<i32: 2, 1>} : memref<48x8xf32, #tpu.memory_space<vmem>>, vector<16x8xf32>
    %c9_31 = arith.constant 9 : index
    %c0_32 = arith.constant 0 : index
    %39 = tpu.strided_load %arg29[%c9_31, %c0_32] {strides = array<i32: 2, 1>} : memref<48x8xf32, #tpu.memory_space<vmem>>, vector<16x8xf32>
    %c0_33 = arith.constant 0 : index
    %c0_34 = arith.constant 0 : index
    %40 = vector.load %arg7[%c0_33, %c0_34] : memref<1x16xf32, #tpu.memory_space<vmem>>, vector<1x16xf32>
    %c0_35 = arith.constant 0 : index
    %c0_36 = arith.constant 0 : index
    %41 = vector.load %arg6[%c0_35, %c0_36] : memref<8x48xf32, #tpu.memory_space<vmem>>, vector<8x16xf32>
    %cst_37 = arith.constant dense<0.000000e+00> : vector<16x16xf32>
    %42 = tpu.matmul %37, %41, %cst_37 {dimension_numbers = #tpu.dot_dimension_numbers<[1], [0], [0], [1], [0, 0, 1, 1], [], []>} : vector<16x8xf32>, vector<8x16xf32>, vector<16x16xf32> -> vector<16x16xf32>
    %43 = vector.broadcast %40 : vector<1x16xf32> to vector<16x16xf32>
    %44 = arith.addf %43, %42 : vector<16x16xf32>
    %c0_38 = arith.constant 0 : index
    %c16_39 = arith.constant 16 : index
    %45 = vector.load %arg6[%c0_38, %c16_39] : memref<8x48xf32, #tpu.memory_space<vmem>>, vector<8x16xf32>
    %cst_40 = arith.constant dense<0.000000e+00> : vector<16x16xf32>
    %46 = tpu.matmul %38, %45, %cst_40 {dimension_numbers = #tpu.dot_dimension_numbers<[1], [0], [0], [1], [0, 0, 1, 1], [], []>} : vector<16x8xf32>, vector<8x16xf32>, vector<16x16xf32> -> vector<16x16xf32>
    %47 = arith.addf %44, %46 : vector<16x16xf32>
    %c0_41 = arith.constant 0 : index
    %c32_42 = arith.constant 32 : index
    %48 = vector.load %arg6[%c0_41, %c32_42] : memref<8x48xf32, #tpu.memory_space<vmem>>, vector<8x16xf32>
    %cst_43 = arith.constant dense<0.000000e+00> : vector<16x16xf32>
    %49 = tpu.matmul %39, %48, %cst_43 {dimension_numbers = #tpu.dot_dimension_numbers<[1], [0], [0], [1], [0, 0, 1, 1], [], []>} : vector<16x8xf32>, vector<8x16xf32>, vector<16x16xf32> -> vector<16x16xf32>
    %50 = arith.addf %47, %49 : vector<16x16xf32>
    %51 = vector.extract_strided_slice %50 {offsets = [0, 0], sizes = [16, 8], strides = [1, 1]} : vector<16x16xf32> to vector<16x8xf32>
    %52 = math.tanh %51 : vector<16x8xf32>
    %53 = vector.extract_strided_slice %50 {offsets = [0, 8], sizes = [16, 8], strides = [1, 1]} : vector<16x16xf32> to vector<16x8xf32>
    %54 = arith.negf %53 : vector<16x8xf32>
    %55 = math.exp %54 : vector<16x8xf32>
    %cst_44 = arith.constant 1.000000e+00 : f32
    %56 = vector.broadcast %cst_44 : f32 to vector<16x8xf32>
    %57 = arith.addf %56, %55 : vector<16x8xf32>
    %58 = arith.divf %56, %57 : vector<16x8xf32>
    %59 = arith.mulf %52, %58 : vector<16x8xf32>
    %c0_45 = arith.constant 0 : index
    %c0_46 = arith.constant 0 : index
    %60 = vector.load %arg8[%c0_45, %c0_46] : memref<8x8xf32, #tpu.memory_space<vmem>>, vector<8x8xf32>
    %cst_47 = arith.constant dense<0.000000e+00> : vector<16x8xf32>
    %61 = tpu.matmul %59, %60, %cst_47 {dimension_numbers = #tpu.dot_dimension_numbers<[1], [0], [0], [1], [0, 0, 1, 1], [], []>} : vector<16x8xf32>, vector<8x8xf32>, vector<16x8xf32> -> vector<16x8xf32>
    %c0_48 = arith.constant 0 : index
    %c0_49 = arith.constant 0 : index
    %62 = vector.load %arg9[%c0_48, %c0_49] : memref<1x8xf32, #tpu.memory_space<vmem>>, vector<1x8xf32>
    %63 = vector.broadcast %62 : vector<1x8xf32> to vector<16x8xf32>
    %64 = arith.addf %61, %63 : vector<16x8xf32>
    %c8_50 = arith.constant 8 : index
    %c0_51 = arith.constant 0 : index
    %65 = vector.load %arg29[%c8_50, %c0_51] : memref<48x8xf32, #tpu.memory_space<vmem>>, vector<16x8xf32>
    tpu.vector_store %arg29[%c8_50, %c0_51], %64 {strides = array<i32>} : memref<48x8xf32, #tpu.memory_space<vmem>>, vector<16x8xf32>,
    %cst_52 = arith.constant 0.000000e+00 : f32
    %66 = vector.broadcast %cst_52 : f32 to vector<16x8xf32>
    %c24 = arith.constant 24 : index
    %c0_53 = arith.constant 0 : index
    %67 = vector.load %arg29[%c24, %c0_53] : memref<48x8xf32, #tpu.memory_space<vmem>>, vector<16x8xf32>
    tpu.vector_store %arg29[%c24, %c0_53], %66 {strides = array<i32>} : memref<48x8xf32, #tpu.memory_space<vmem>>, vector<16x8xf32>,
    %c7_54 = arith.constant 7 : index
    %c0_55 = arith.constant 0 : index
    %68 = vector.load %arg29[%c7_54, %c0_55] : memref<48x8xf32, #tpu.memory_space<vmem>>, vector<16x8xf32>
    %c8_56 = arith.constant 8 : index
    %c0_57 = arith.constant 0 : index
    %69 = vector.load %arg29[%c8_56, %c0_57] : memref<48x8xf32, #tpu.memory_space<vmem>>, vector<16x8xf32>
    %c9_58 = arith.constant 9 : index
    %c0_59 = arith.constant 0 : index
    %70 = vector.load %arg29[%c9_58, %c0_59] : memref<48x8xf32, #tpu.memory_space<vmem>>, vector<16x8xf32>
    %c0_60 = arith.constant 0 : index
    %c0_61 = arith.constant 0 : index
    %71 = vector.load %arg11[%c0_60, %c0_61] : memref<1x16xf32, #tpu.memory_space<vmem>>, vector<1x16xf32>
    %c0_62 = arith.constant 0 : index
    %c0_63 = arith.constant 0 : index
    %72 = vector.load %arg10[%c0_62, %c0_63] : memref<8x48xf32, #tpu.memory_space<vmem>>, vector<8x16xf32>
    %cst_64 = arith.constant dense<0.000000e+00> : vector<16x16xf32>
    %73 = tpu.matmul %68, %72, %cst_64 {dimension_numbers = #tpu.dot_dimension_numbers<[1], [0], [0], [1], [0, 0, 1, 1], [], []>} : vector<16x8xf32>, vector<8x16xf32>, vector<16x16xf32> -> vector<16x16xf32>
    %74 = vector.broadcast %71 : vector<1x16xf32> to vector<16x16xf32>
    %75 = arith.addf %74, %73 : vector<16x16xf32>
    %c0_65 = arith.constant 0 : index
    %c16_66 = arith.constant 16 : index
    %76 = vector.load %arg10[%c0_65, %c16_66] : memref<8x48xf32, #tpu.memory_space<vmem>>, vector<8x16xf32>
    %cst_67 = arith.constant dense<0.000000e+00> : vector<16x16xf32>
    %77 = tpu.matmul %69, %76, %cst_67 {dimension_numbers = #tpu.dot_dimension_numbers<[1], [0], [0], [1], [0, 0, 1, 1], [], []>} : vector<16x8xf32>, vector<8x16xf32>, vector<16x16xf32> -> vector<16x16xf32>
    %78 = arith.addf %75, %77 : vector<16x16xf32>
    %c0_68 = arith.constant 0 : index
    %c32_69 = arith.constant 32 : index
    %79 = vector.load %arg10[%c0_68, %c32_69] : memref<8x48xf32, #tpu.memory_space<vmem>>, vector<8x16xf32>
    %cst_70 = arith.constant dense<0.000000e+00> : vector<16x16xf32>
    %80 = tpu.matmul %70, %79, %cst_70 {dimension_numbers = #tpu.dot_dimension_numbers<[1], [0], [0], [1], [0, 0, 1, 1], [], []>} : vector<16x8xf32>, vector<8x16xf32>, vector<16x16xf32> -> vector<16x16xf32>
    %81 = arith.addf %78, %80 : vector<16x16xf32>
    %82 = vector.extract_strided_slice %81 {offsets = [0, 0], sizes = [16, 8], strides = [1, 1]} : vector<16x16xf32> to vector<16x8xf32>
    %83 = math.tanh %82 : vector<16x8xf32>
    %84 = vector.extract_strided_slice %81 {offsets = [0, 8], sizes = [16, 8], strides = [1, 1]} : vector<16x16xf32> to vector<16x8xf32>
    %85 = arith.negf %84 : vector<16x8xf32>
    %86 = math.exp %85 : vector<16x8xf32>
    %cst_71 = arith.constant 1.000000e+00 : f32
    %87 = vector.broadcast %cst_71 : f32 to vector<16x8xf32>
    %88 = arith.addf %87, %86 : vector<16x8xf32>
    %89 = arith.divf %87, %88 : vector<16x8xf32>
    %90 = arith.mulf %83, %89 : vector<16x8xf32>
    %c0_72 = arith.constant 0 : index
    %c0_73 = arith.constant 0 : index
    %91 = vector.load %arg12[%c0_72, %c0_73] : memref<8x8xf32, #tpu.memory_space<vmem>>, vector<8x8xf32>
    %cst_74 = arith.constant dense<0.000000e+00> : vector<16x8xf32>
    %92 = tpu.matmul %90, %91, %cst_74 {dimension_numbers = #tpu.dot_dimension_numbers<[1], [0], [0], [1], [0, 0, 1, 1], [], []>} : vector<16x8xf32>, vector<8x8xf32>, vector<16x8xf32> -> vector<16x8xf32>
    %c0_75 = arith.constant 0 : index
    %c0_76 = arith.constant 0 : index
    %93 = vector.load %arg13[%c0_75, %c0_76] : memref<1x8xf32, #tpu.memory_space<vmem>>, vector<1x8xf32>
    %94 = vector.broadcast %93 : vector<1x8xf32> to vector<16x8xf32>
    %95 = arith.addf %92, %94 : vector<16x8xf32>
    %cst_77 = arith.constant 0.707106769 : f32
    %96 = vector.broadcast %cst_77 : f32 to vector<16x8xf32>
    %97 = arith.mulf %69, %96 : vector<16x8xf32>
    %98 = arith.addf %95, %97 : vector<16x8xf32>
    %c8_78 = arith.constant 8 : index
    %c0_79 = arith.constant 0 : index
    %99 = vector.load %arg29[%c8_78, %c0_79] : memref<48x8xf32, #tpu.memory_space<vmem>>, vector<16x8xf32>
    tpu.vector_store %arg29[%c8_78, %c0_79], %98 {strides = array<i32>} : memref<48x8xf32, #tpu.memory_space<vmem>>, vector<16x8xf32>,
    %c7_80 = arith.constant 7 : index
    %c0_81 = arith.constant 0 : index
    %100 = tpu.strided_load %arg29[%c7_80, %c0_81] {strides = array<i32: 2, 1>} : memref<48x8xf32, #tpu.memory_space<vmem>>, vector<8x8xf32>
    %c8_82 = arith.constant 8 : index
    %c0_83 = arith.constant 0 : index
    %101 = tpu.strided_load %arg29[%c8_82, %c0_83] {strides = array<i32: 2, 1>} : memref<48x8xf32, #tpu.memory_space<vmem>>, vector<8x8xf32>
    %c9_84 = arith.constant 9 : index
    %c0_85 = arith.constant 0 : index
    %102 = tpu.strided_load %arg29[%c9_84, %c0_85] {strides = array<i32: 2, 1>} : memref<48x8xf32, #tpu.memory_space<vmem>>, vector<8x8xf32>
    %c0_86 = arith.constant 0 : index
    %c0_87 = arith.constant 0 : index
    %103 = vector.load %arg15[%c0_86, %c0_87] : memref<1x16xf32, #tpu.memory_space<vmem>>, vector<1x16xf32>
    %c0_88 = arith.constant 0 : index
    %c0_89 = arith.constant 0 : index
    %104 = vector.load %arg14[%c0_88, %c0_89] : memref<8x48xf32, #tpu.memory_space<vmem>>, vector<8x16xf32>
    %cst_90 = arith.constant dense<0.000000e+00> : vector<8x16xf32>
    %105 = tpu.matmul %100, %104, %cst_90 {dimension_numbers = #tpu.dot_dimension_numbers<[1], [0], [0], [1], [0, 0, 1, 1], [], []>} : vector<8x8xf32>, vector<8x16xf32>, vector<8x16xf32> -> vector<8x16xf32>
    %106 = vector.broadcast %103 : vector<1x16xf32> to vector<8x16xf32>
    %107 = arith.addf %106, %105 : vector<8x16xf32>
    %c0_91 = arith.constant 0 : index
    %c16_92 = arith.constant 16 : index
    %108 = vector.load %arg14[%c0_91, %c16_92] : memref<8x48xf32, #tpu.memory_space<vmem>>, vector<8x16xf32>
    %cst_93 = arith.constant dense<0.000000e+00> : vector<8x16xf32>
    %109 = tpu.matmul %101, %108, %cst_93 {dimension_numbers = #tpu.dot_dimension_numbers<[1], [0], [0], [1], [0, 0, 1, 1], [], []>} : vector<8x8xf32>, vector<8x16xf32>, vector<8x16xf32> -> vector<8x16xf32>
    %110 = arith.addf %107, %109 : vector<8x16xf32>
    %c0_94 = arith.constant 0 : index
    %c32_95 = arith.constant 32 : index
    %111 = vector.load %arg14[%c0_94, %c32_95] : memref<8x48xf32, #tpu.memory_space<vmem>>, vector<8x16xf32>
    %cst_96 = arith.constant dense<0.000000e+00> : vector<8x16xf32>
    %112 = tpu.matmul %102, %111, %cst_96 {dimension_numbers = #tpu.dot_dimension_numbers<[1], [0], [0], [1], [0, 0, 1, 1], [], []>} : vector<8x8xf32>, vector<8x16xf32>, vector<8x16xf32> -> vector<8x16xf32>
    %113 = arith.addf %110, %112 : vector<8x16xf32>
    %114 = vector.extract_strided_slice %113 {offsets = [0, 0], sizes = [8, 8], strides = [1, 1]} : vector<8x16xf32> to vector<8x8xf32>
    %115 = math.tanh %114 : vector<8x8xf32>
    %116 = vector.extract_strided_slice %113 {offsets = [0, 8], sizes = [8, 8], strides = [1, 1]} : vector<8x16xf32> to vector<8x8xf32>
    %117 = arith.negf %116 : vector<8x8xf32>
    %118 = math.exp %117 : vector<8x8xf32>
    %cst_97 = arith.constant 1.000000e+00 : f32
    %119 = vector.broadcast %cst_97 : f32 to vector<8x8xf32>
    %120 = arith.addf %119, %118 : vector<8x8xf32>
    %121 = arith.divf %119, %120 : vector<8x8xf32>
    %122 = arith.mulf %115, %121 : vector<8x8xf32>
    %c0_98 = arith.constant 0 : index
    %c0_99 = arith.constant 0 : index
    %123 = vector.load %arg16[%c0_98, %c0_99] : memref<8x8xf32, #tpu.memory_space<vmem>>, vector<8x8xf32>
    %cst_100 = arith.constant dense<0.000000e+00> : vector<8x8xf32>
    %124 = tpu.matmul %122, %123, %cst_100 {dimension_numbers = #tpu.dot_dimension_numbers<[1], [0], [0], [1], [0, 0, 1, 1], [], []>} : vector<8x8xf32>, vector<8x8xf32>, vector<8x8xf32> -> vector<8x8xf32>
    %c0_101 = arith.constant 0 : index
    %c0_102 = arith.constant 0 : index
    %125 = vector.load %arg17[%c0_101, %c0_102] : memref<1x8xf32, #tpu.memory_space<vmem>>, vector<1x8xf32>
    %126 = vector.broadcast %125 : vector<1x8xf32> to vector<8x8xf32>
    %127 = arith.addf %124, %126 : vector<8x8xf32>
    %c8_103 = arith.constant 8 : index
    %c0_104 = arith.constant 0 : index
    %128 = vector.load %arg29[%c8_103, %c0_104] : memref<48x8xf32, #tpu.memory_space<vmem>>, vector<8x8xf32>
    tpu.vector_store %arg29[%c8_103, %c0_104], %127 {strides = array<i32>} : memref<48x8xf32, #tpu.memory_space<vmem>>, vector<8x8xf32>,
    %cst_105 = arith.constant 0.000000e+00 : f32
    %129 = vector.broadcast %cst_105 : f32 to vector<8x8xf32>
    %c16_106 = arith.constant 16 : index
    %c0_107 = arith.constant 0 : index
    %130 = vector.load %arg29[%c16_106, %c0_107] : memref<48x8xf32, #tpu.memory_space<vmem>>, vector<8x8xf32>
    tpu.vector_store %arg29[%c16_106, %c0_107], %129 {strides = array<i32>} : memref<48x8xf32, #tpu.memory_space<vmem>>, vector<8x8xf32>,
    %c6 = arith.constant 6 : index
    %c0_108 = arith.constant 0 : index
    %131 = vector.load %arg29[%c6, %c0_108] : memref<48x8xf32, #tpu.memory_space<vmem>>, vector<8x8xf32>
    %c8_109 = arith.constant 8 : index
    %c0_110 = arith.constant 0 : index
    %132 = vector.load %arg29[%c8_109, %c0_110] : memref<48x8xf32, #tpu.memory_space<vmem>>, vector<8x8xf32>
    %c10 = arith.constant 10 : index
    %c0_111 = arith.constant 0 : index
    %133 = vector.load %arg29[%c10, %c0_111] : memref<48x8xf32, #tpu.memory_space<vmem>>, vector<8x8xf32>
    %c0_112 = arith.constant 0 : index
    %c0_113 = arith.constant 0 : index
    %134 = vector.load %arg19[%c0_112, %c0_113] : memref<1x16xf32, #tpu.memory_space<vmem>>, vector<1x16xf32>
    %c0_114 = arith.constant 0 : index
    %c0_115 = arith.constant 0 : index
    %135 = vector.load %arg18[%c0_114, %c0_115] : memref<8x48xf32, #tpu.memory_space<vmem>>, vector<8x16xf32>
    %cst_116 = arith.constant dense<0.000000e+00> : vector<8x16xf32>
    %136 = tpu.matmul %131, %135, %cst_116 {dimension_numbers = #tpu.dot_dimension_numbers<[1], [0], [0], [1], [0, 0, 1, 1], [], []>} : vector<8x8xf32>, vector<8x16xf32>, vector<8x16xf32> -> vector<8x16xf32>
    %137 = vector.broadcast %134 : vector<1x16xf32> to vector<8x16xf32>
    %138 = arith.addf %137, %136 : vector<8x16xf32>
    %c0_117 = arith.constant 0 : index
    %c16_118 = arith.constant 16 : index
    %139 = vector.load %arg18[%c0_117, %c16_118] : memref<8x48xf32, #tpu.memory_space<vmem>>, vector<8x16xf32>
    %cst_119 = arith.constant dense<0.000000e+00> : vector<8x16xf32>
    %140 = tpu.matmul %132, %139, %cst_119 {dimension_numbers = #tpu.dot_dimension_numbers<[1], [0], [0], [1], [0, 0, 1, 1], [], []>} : vector<8x8xf32>, vector<8x16xf32>, vector<8x16xf32> -> vector<8x16xf32>
    %141 = arith.addf %138, %140 : vector<8x16xf32>
    %c0_120 = arith.constant 0 : index
    %c32_121 = arith.constant 32 : index
    %142 = vector.load %arg18[%c0_120, %c32_121] : memref<8x48xf32, #tpu.memory_space<vmem>>, vector<8x16xf32>
    %cst_122 = arith.constant dense<0.000000e+00> : vector<8x16xf32>
    %143 = tpu.matmul %133, %142, %cst_122 {dimension_numbers = #tpu.dot_dimension_numbers<[1], [0], [0], [1], [0, 0, 1, 1], [], []>} : vector<8x8xf32>, vector<8x16xf32>, vector<8x16xf32> -> vector<8x16xf32>
    %144 = arith.addf %141, %143 : vector<8x16xf32>
    %145 = vector.extract_strided_slice %144 {offsets = [0, 0], sizes = [8, 8], strides = [1, 1]} : vector<8x16xf32> to vector<8x8xf32>
    %146 = math.tanh %145 : vector<8x8xf32>
    %147 = vector.extract_strided_slice %144 {offsets = [0, 8], sizes = [8, 8], strides = [1, 1]} : vector<8x16xf32> to vector<8x8xf32>
    %148 = arith.negf %147 : vector<8x8xf32>
    %149 = math.exp %148 : vector<8x8xf32>
    %cst_123 = arith.constant 1.000000e+00 : f32
    %150 = vector.broadcast %cst_123 : f32 to vector<8x8xf32>
    %151 = arith.addf %150, %149 : vector<8x8xf32>
    %152 = arith.divf %150, %151 : vector<8x8xf32>
    %153 = arith.mulf %146, %152 : vector<8x8xf32>
    %c0_124 = arith.constant 0 : index
    %c0_125 = arith.constant 0 : index
    %154 = vector.load %arg20[%c0_124, %c0_125] : memref<8x8xf32, #tpu.memory_space<vmem>>, vector<8x8xf32>
    %cst_126 = arith.constant dense<0.000000e+00> : vector<8x8xf32>
    %155 = tpu.matmul %153, %154, %cst_126 {dimension_numbers = #tpu.dot_dimension_numbers<[1], [0], [0], [1], [0, 0, 1, 1], [], []>} : vector<8x8xf32>, vector<8x8xf32>, vector<8x8xf32> -> vector<8x8xf32>
    %c0_127 = arith.constant 0 : index
    %c0_128 = arith.constant 0 : index
    %156 = vector.load %arg21[%c0_127, %c0_128] : memref<1x8xf32, #tpu.memory_space<vmem>>, vector<1x8xf32>
    %157 = vector.broadcast %156 : vector<1x8xf32> to vector<8x8xf32>
    %158 = arith.addf %155, %157 : vector<8x8xf32>
    %cst_129 = arith.constant 0.707106769 : f32
    %159 = vector.broadcast %cst_129 : f32 to vector<8x8xf32>
    %160 = arith.mulf %132, %159 : vector<8x8xf32>
    %161 = arith.addf %158, %160 : vector<8x8xf32>
    %c8_130 = arith.constant 8 : index
    %c0_131 = arith.constant 0 : index
    %162 = vector.load %arg29[%c8_130, %c0_131] : memref<48x8xf32, #tpu.memory_space<vmem>>, vector<8x8xf32>
    tpu.vector_store %arg29[%c8_130, %c0_131], %161 {strides = array<i32>} : memref<48x8xf32, #tpu.memory_space<vmem>>, vector<8x8xf32>,
    %c4 = arith.constant 4 : index
    %c0_132 = arith.constant 0 : index
    %163 = vector.load %arg29[%c4, %c0_132] : memref<48x8xf32, #tpu.memory_space<vmem>>, vector<8x8xf32>
    %c8_133 = arith.constant 8 : index
    %c0_134 = arith.constant 0 : index
    %164 = vector.load %arg29[%c8_133, %c0_134] : memref<48x8xf32, #tpu.memory_space<vmem>>, vector<8x8xf32>
    %c12 = arith.constant 12 : index
    %c0_135 = arith.constant 0 : index
    %165 = vector.load %arg29[%c12, %c0_135] : memref<48x8xf32, #tpu.memory_space<vmem>>, vector<8x8xf32>
    %c0_136 = arith.constant 0 : index
    %c0_137 = arith.constant 0 : index
    %166 = vector.load %arg23[%c0_136, %c0_137] : memref<1x16xf32, #tpu.memory_space<vmem>>, vector<1x16xf32>
    %c0_138 = arith.constant 0 : index
    %c0_139 = arith.constant 0 : index
    %167 = vector.load %arg22[%c0_138, %c0_139] : memref<8x48xf32, #tpu.memory_space<vmem>>, vector<8x16xf32>
    %cst_140 = arith.constant dense<0.000000e+00> : vector<8x16xf32>
    %168 = tpu.matmul %163, %167, %cst_140 {dimension_numbers = #tpu.dot_dimension_numbers<[1], [0], [0], [1], [0, 0, 1, 1], [], []>} : vector<8x8xf32>, vector<8x16xf32>, vector<8x16xf32> -> vector<8x16xf32>
    %169 = vector.broadcast %166 : vector<1x16xf32> to vector<8x16xf32>
    %170 = arith.addf %169, %168 : vector<8x16xf32>
    %c0_141 = arith.constant 0 : index
    %c16_142 = arith.constant 16 : index
    %171 = vector.load %arg22[%c0_141, %c16_142] : memref<8x48xf32, #tpu.memory_space<vmem>>, vector<8x16xf32>
    %cst_143 = arith.constant dense<0.000000e+00> : vector<8x16xf32>
    %172 = tpu.matmul %164, %171, %cst_143 {dimension_numbers = #tpu.dot_dimension_numbers<[1], [0], [0], [1], [0, 0, 1, 1], [], []>} : vector<8x8xf32>, vector<8x16xf32>, vector<8x16xf32> -> vector<8x16xf32>
    %173 = arith.addf %170, %172 : vector<8x16xf32>
    %c0_144 = arith.constant 0 : index
    %c32_145 = arith.constant 32 : index
    %174 = vector.load %arg22[%c0_144, %c32_145] : memref<8x48xf32, #tpu.memory_space<vmem>>, vector<8x16xf32>
    %cst_146 = arith.constant dense<0.000000e+00> : vector<8x16xf32>
    %175 = tpu.matmul %165, %174, %cst_146 {dimension_numbers = #tpu.dot_dimension_numbers<[1], [0], [0], [1], [0, 0, 1, 1], [], []>} : vector<8x8xf32>, vector<8x16xf32>, vector<8x16xf32> -> vector<8x16xf32>
    %176 = arith.addf %173, %175 : vector<8x16xf32>
    %177 = vector.extract_strided_slice %176 {offsets = [0, 0], sizes = [8, 8], strides = [1, 1]} : vector<8x16xf32> to vector<8x8xf32>
    %178 = math.tanh %177 : vector<8x8xf32>
    %179 = vector.extract_strided_slice %176 {offsets = [0, 8], sizes = [8, 8], strides = [1, 1]} : vector<8x16xf32> to vector<8x8xf32>
    %180 = arith.negf %179 : vector<8x8xf32>
    %181 = math.exp %180 : vector<8x8xf32>
    %cst_147 = arith.constant 1.000000e+00 : f32
    %182 = vector.broadcast %cst_147 : f32 to vector<8x8xf32>
    %183 = arith.addf %182, %181 : vector<8x8xf32>
    %184 = arith.divf %182, %183 : vector<8x8xf32>
    %185 = arith.mulf %178, %184 : vector<8x8xf32>
    %c0_148 = arith.constant 0 : index
    %c0_149 = arith.constant 0 : index
    %186 = vector.load %arg24[%c0_148, %c0_149] : memref<8x8xf32, #tpu.memory_space<vmem>>, vector<8x8xf32>
    %cst_150 = arith.constant dense<0.000000e+00> : vector<8x8xf32>
    %187 = tpu.matmul %185, %186, %cst_150 {dimension_numbers = #tpu.dot_dimension_numbers<[1], [0], [0], [1], [0, 0, 1, 1], [], []>} : vector<8x8xf32>, vector<8x8xf32>, vector<8x8xf32> -> vector<8x8xf32>
    %c0_151 = arith.constant 0 : index
    %c0_152 = arith.constant 0 : index
    %188 = vector.load %arg25[%c0_151, %c0_152] : memref<1x8xf32, #tpu.memory_space<vmem>>, vector<1x8xf32>
    %189 = vector.broadcast %188 : vector<1x8xf32> to vector<8x8xf32>
    %190 = arith.addf %187, %189 : vector<8x8xf32>
    %cst_153 = arith.constant 0.707106769 : f32
    %191 = vector.broadcast %cst_153 : f32 to vector<8x8xf32>
    %192 = arith.mulf %164, %191 : vector<8x8xf32>
    %193 = arith.addf %190, %192 : vector<8x8xf32>
    %c8_154 = arith.constant 8 : index
    %c0_155 = arith.constant 0 : index
    %194 = vector.load %arg29[%c8_154, %c0_155] : memref<48x8xf32, #tpu.memory_space<vmem>>, vector<8x8xf32>
    tpu.vector_store %arg29[%c8_154, %c0_155], %193 {strides = array<i32>} : memref<48x8xf32, #tpu.memory_space<vmem>>, vector<8x8xf32>,
    %c8_156 = arith.constant 8 : index
    %c0_157 = arith.constant 0 : index
    %195 = vector.load %arg29[%c8_156, %c0_157] : memref<48x8xf32, #tpu.memory_space<vmem>>, vector<8x8xf32>
    %c0_158 = arith.constant 0 : index
    %c0_159 = arith.constant 0 : index
    %196 = vector.load %arg26[%c0_158, %c0_159] : memref<8x16xf32, #tpu.memory_space<vmem>>, vector<8x16xf32>
    %cst_160 = arith.constant dense<0.000000e+00> : vector<8x16xf32>
    %197 = tpu.matmul %195, %196, %cst_160 {dimension_numbers = #tpu.dot_dimension_numbers<[1], [0], [0], [1], [0, 0, 1, 1], [], []>} : vector<8x8xf32>, vector<8x16xf32>, vector<8x16xf32> -> vector<8x16xf32>
    %c0_161 = arith.constant 0 : index
    %c0_162 = arith.constant 0 : index
    %198 = vector.load %arg27[%c0_161, %c0_162] : memref<1x16xf32, #tpu.memory_space<vmem>>, vector<1x16xf32>
    %199 = vector.broadcast %198 : vector<1x16xf32> to vector<8x16xf32>
    %200 = arith.addf %197, %199 : vector<8x16xf32>
    %c0_163 = arith.constant 0 : index
    %c0_164 = arith.constant 0 : index
    %c0_165 = arith.constant 0 : index
    %201 = vector.load %arg28[%c0_163, %c0_164, %c0_165] : memref<1x8x16xf32, #tpu.memory_space<vmem>>, vector<1x8x16xf32>
    %202 = vector.shape_cast %201 : vector<1x8x16xf32> to vector<8x16xf32>
    %203 = vector.shape_cast %200 : vector<8x16xf32> to vector<1x8x16xf32>
    tpu.vector_store %arg28[%c0_163, %c0_164, %c0_165], %203 {strides = array<i32>} : memref<1x8x16xf32, #tpu.memory_space<vmem>>, vector<1x8x16xf32>,
    return
  }
  func.func @transform_0(%arg0: i32) -> (i32, i32, i32) {
    %c0_i32 = arith.constant 0 : i32
    %c0_i32_0 = arith.constant 0 : i32
    %c0_i32_1 = arith.constant 0 : i32
    return %arg0, %c0_i32, %c0_i32_0 : i32, i32, i32
  }
  func.func @transform_1(%arg0: i32) -> (i32, i32) {
    %c0_i32 = arith.constant 0 : i32
    %c0_i32_0 = arith.constant 0 : i32
    %c0_i32_1 = arith.constant 0 : i32
    return %c0_i32, %c0_i32_0 : i32, i32
  }
  func.func @transform_2(%arg0: i32) -> (i32, i32) {
    %c0_i32 = arith.constant 0 : i32
    %c0_i32_0 = arith.constant 0 : i32
    %c0_i32_1 = arith.constant 0 : i32
    return %c0_i32, %c0_i32_0 : i32, i32
  }
  func.func @transform_3(%arg0: i32) -> (i32, i32) {
    %c0_i32 = arith.constant 0 : i32
    %c0_i32_0 = arith.constant 0 : i32
    %c0_i32_1 = arith.constant 0 : i32
    return %c0_i32, %c0_i32_0 : i32, i32
  }
  func.func @transform_4(%arg0: i32) -> (i32, i32) {
    %c0_i32 = arith.constant 0 : i32
    %c0_i32_0 = arith.constant 0 : i32
    %c0_i32_1 = arith.constant 0 : i32
    return %c0_i32, %c0_i32_0 : i32, i32
  }
  func.func @transform_5(%arg0: i32) -> (i32, i32) {
    %c0_i32 = arith.constant 0 : i32
    %c0_i32_0 = arith.constant 0 : i32
    %c0_i32_1 = arith.constant 0 : i32
    return %c0_i32, %c0_i32_0 : i32, i32
  }
  func.func @transform_6(%arg0: i32) -> (i32, i32) {
    %c0_i32 = arith.constant 0 : i32
    %c0_i32_0 = arith.constant 0 : i32
    %c0_i32_1 = arith.constant 0 : i32
    return %c0_i32, %c0_i32_0 : i32, i32
  }
  func.func @transform_7(%arg0: i32) -> (i32, i32) {
    %c0_i32 = arith.constant 0 : i32
    %c0_i32_0 = arith.constant 0 : i32
    %c0_i32_1 = arith.constant 0 : i32
    return %c0_i32, %c0_i32_0 : i32, i32
  }
  func.func @transform_8(%arg0: i32) -> (i32, i32) {
    %c0_i32 = arith.constant 0 : i32
    %c0_i32_0 = arith.constant 0 : i32
    %c0_i32_1 = arith.constant 0 : i32
    return %c0_i32, %c0_i32_0 : i32, i32
  }
  func.func @transform_9(%arg0: i32) -> (i32, i32) {
    %c0_i32 = arith.constant 0 : i32
    %c0_i32_0 = arith.constant 0 : i32
    %c0_i32_1 = arith.constant 0 : i32
    return %c0_i32, %c0_i32_0 : i32, i32
  }
  func.func @transform_10(%arg0: i32) -> (i32, i32) {
    %c0_i32 = arith.constant 0 : i32
    %c0_i32_0 = arith.constant 0 : i32
    %c0_i32_1 = arith.constant 0 : i32
    return %c0_i32, %c0_i32_0 : i32, i32
  }
  func.func @transform_11(%arg0: i32) -> (i32, i32) {
    %c0_i32 = arith.constant 0 : i32
    %c0_i32_0 = arith.constant 0 : i32
    %c0_i32_1 = arith.constant 0 : i32
    return %c0_i32, %c0_i32_0 : i32, i32
  }
  func.func @transform_12(%arg0: i32) -> (i32, i32) {
    %c0_i32 = arith.constant 0 : i32
    %c0_i32_0 = arith.constant 0 : i32
    %c0_i32_1 = arith.constant 0 : i32
    return %c0_i32, %c0_i32_0 : i32, i32
  }
  func.func @transform_13(%arg0: i32) -> (i32, i32) {
    %c0_i32 = arith.constant 0 : i32
    %c0_i32_0 = arith.constant 0 : i32
    %c0_i32_1 = arith.constant 0 : i32
    return %c0_i32, %c0_i32_0 : i32, i32
  }
  func.func @transform_14(%arg0: i32) -> (i32, i32) {
    %c0_i32 = arith.constant 0 : i32
    %c0_i32_0 = arith.constant 0 : i32
    %c0_i32_1 = arith.constant 0 : i32
    return %c0_i32, %c0_i32_0 : i32, i32
  }
  func.func @transform_15(%arg0: i32) -> (i32, i32) {
    %c0_i32 = arith.constant 0 : i32
    %c0_i32_0 = arith.constant 0 : i32
    %c0_i32_1 = arith.constant 0 : i32
    return %c0_i32, %c0_i32_0 : i32, i32
  }
  func.func @transform_16(%arg0: i32) -> (i32, i32) {
    %c0_i32 = arith.constant 0 : i32
    %c0_i32_0 = arith.constant 0 : i32
    %c0_i32_1 = arith.constant 0 : i32
    return %c0_i32, %c0_i32_0 : i32, i32
  }
  func.func @transform_17(%arg0: i32) -> (i32, i32) {
    %c0_i32 = arith.constant 0 : i32
    %c0_i32_0 = arith.constant 0 : i32
    %c0_i32_1 = arith.constant 0 : i32
    return %c0_i32, %c0_i32_0 : i32, i32
  }
  func.func @transform_18(%arg0: i32) -> (i32, i32) {
    %c0_i32 = arith.constant 0 : i32
    %c0_i32_0 = arith.constant 0 : i32
    %c0_i32_1 = arith.constant 0 : i32
    return %c0_i32, %c0_i32_0 : i32, i32
  }
  func.func @transform_19(%arg0: i32) -> (i32, i32) {
    %c0_i32 = arith.constant 0 : i32
    %c0_i32_0 = arith.constant 0 : i32
    %c0_i32_1 = arith.constant 0 : i32
    return %c0_i32, %c0_i32_0 : i32, i32
  }
  func.func @transform_20(%arg0: i32) -> (i32, i32) {
    %c0_i32 = arith.constant 0 : i32
    %c0_i32_0 = arith.constant 0 : i32
    %c0_i32_1 = arith.constant 0 : i32
    return %c0_i32, %c0_i32_0 : i32, i32
  }
  func.func @transform_21(%arg0: i32) -> (i32, i32) {
    %c0_i32 = arith.constant 0 : i32
    %c0_i32_0 = arith.constant 0 : i32
    %c0_i32_1 = arith.constant 0 : i32
    return %c0_i32, %c0_i32_0 : i32, i32
  }
  func.func @transform_22(%arg0: i32) -> (i32, i32) {
    %c0_i32 = arith.constant 0 : i32
    %c0_i32_0 = arith.constant 0 : i32
    %c0_i32_1 = arith.constant 0 : i32
    return %c0_i32, %c0_i32_0 : i32, i32
  }
  func.func @transform_23(%arg0: i32) -> (i32, i32) {
    %c0_i32 = arith.constant 0 : i32
    %c0_i32_0 = arith.constant 0 : i32
    %c0_i32_1 = arith.constant 0 : i32
    return %c0_i32, %c0_i32_0 : i32, i32
  }
  func.func @transform_24(%arg0: i32) -> (i32, i32) {
    %c0_i32 = arith.constant 0 : i32
    %c0_i32_0 = arith.constant 0 : i32
    %c0_i32_1 = arith.constant 0 : i32
    return %c0_i32, %c0_i32_0 : i32, i32
  }
  func.func @transform_25(%arg0: i32) -> (i32, i32) {
    %c0_i32 = arith.constant 0 : i32
    %c0_i32_0 = arith.constant 0 : i32
    %c0_i32_1 = arith.constant 0 : i32
    return %c0_i32, %c0_i32_0 : i32, i32
  }
  func.func @transform_26(%arg0: i32) -> (i32, i32) {
    %c0_i32 = arith.constant 0 : i32
    %c0_i32_0 = arith.constant 0 : i32
    %c0_i32_1 = arith.constant 0 : i32
    return %c0_i32, %c0_i32_0 : i32, i32
  }
  func.func @transform_27(%arg0: i32) -> (i32, i32, i32) {
    %c0_i32 = arith.constant 0 : i32
    %c0_i32_0 = arith.constant 0 : i32
    %c0_i32_1 = arith.constant 0 : i32
    return %arg0, %c0_i32, %c0_i32_0 : i32, i32, i32
  }
}

</mosaic_0001>

<bundles_post_ra>
// kernel: tpu_custom_call.1
= control target key start
LH: loop header
LB: loop body
LE: loop exit
PB: predicated region body
PF: predicated region fallthrough
CT: control target
= control target key end

     0   :  { %s3471_s0 = inlined_call_operand.vmem [shape: f32[2,32,8], index: 0, kind: input, shape index: {}]   ;;  %s3472_s1 = inlined_call_operand.vmem [shape: f32[8,48], index: 1, kind: input, shape index: {}]   ;;  %s3473_s2 = inlined_call_operand.vmem [shape: f32[1,16], index: 2, kind: input, shape index: {}]   ;;  %s3474_s3 = inlined_call_operand.vmem [shape: f32[8,8], index: 3, kind: input, shape index: {}]   ;;  %s3475_s4 = inlined_call_operand.hbm [shape: f32[1,8], index: 4, kind: input, shape index: {}]   ;;  %s3476_s5 = inlined_call_operand.vmem [shape: f32[8,48], index: 5, kind: input, shape index: {}]   ;;  %s3477_s6 = inlined_call_operand.hbm [shape: f32[1,16], index: 6, kind: input, shape index: {}]   ;;  %s3478_s7 = inlined_call_operand.vmem [shape: f32[8,8], index: 7, kind: input, shape index: {}]   ;;  %s3479_s8 = inlined_call_operand.hbm [shape: f32[1,8], index: 8, kind: input, shape index: {}]   ;;  %s3480_s9 = inlined_call_operand.vmem [shape: f32[8,48], index: 9, kind: input, shape index: {}]   ;;  %s3481_s10 = inlined_call_operand.hbm [shape: f32[1,16], index: 10, kind: input, shape index: {}]   ;;  %s3482_s11 = inlined_call_operand.vmem [shape: f32[8,8], index: 11, kind: input, shape index: {}]   ;;  %s3483_s12 = inlined_call_operand.hbm [shape: f32[1,8], index: 12, kind: input, shape index: {}]   ;;  %s3484_s13 = inlined_call_operand.vmem [shape: f32[8,48], index: 13, kind: input, shape index: {}]   ;;  %s3485_s14 = inlined_call_operand.hbm [shape: f32[1,16], index: 14, kind: input, shape index: {}]   ;;  %s3486_s15 = inlined_call_operand.vmem [shape: f32[8,8], index: 15, kind: input, shape index: {}]   ;;  %s3487_s16 = inlined_call_operand.hbm [shape: f32[1,8], index: 16, kind: input, shape index: {}]   ;;  %s3488_s17 = inlined_call_operand.vmem [shape: f32[8,48], index: 17, kind: input, shape index: {}]   ;;  %s3489_s18 = inlined_call_operand.hbm [shape: f32[1,16], index: 18, kind: input, shape index: {}]   ;;  %s3490_s19 = inlined_call_operand.vmem [shape: f32[8,8], index: 19, kind: input, shape index: {}]   ;;  %s3491_s20 = inlined_call_operand.vmem [shape: f32[1,8], index: 20, kind: input, shape index: {}]   ;;  %s3492_s21 = inlined_call_operand.vmem [shape: f32[8,48], index: 21, kind: input, shape index: {}]   ;;  %s3493_s22 = inlined_call_operand.vmem [shape: f32[1,16], index: 22, kind: input, shape index: {}]   ;;  %s3494_s23 = inlined_call_operand.vmem [shape: f32[8,8], index: 23, kind: input, shape index: {}]   ;;  %s3495_s24 = inlined_call_operand.vmem [shape: f32[1,8], index: 24, kind: input, shape index: {}]   ;;  %s3496_s25 = inlined_call_operand.hbm [shape: f32[8,16], index: 25, kind: input, shape index: {}]   ;;  %s3497_s26 = inlined_call_operand.vmem [shape: f32[1,16], index: 26, kind: input, shape index: {}]   ;;  %s3498_s27 = inlined_call_operand.hbm [shape: f32[2,8,16], index: 27, kind: output, shape index: {}]  }
   0x1   :  { %3508 = sst [smem:[#allocation32_spill]] %s3471_s0 }
   0x2   :  { %3509 = sst [smem:[#allocation33_spill]] %s3472_s1 }
   0x3   :  { %3510 = sst [smem:[#allocation34_spill]] %s3473_s2 }
   0x4   :  { %3511 = sst [smem:[#allocation35_spill]] %s3474_s3 }
   0x5   :  { %3512 = sst [smem:[#allocation36_spill]] %s3475_s4 }
   0x6   :  { %3513 = sst [smem:[#allocation37_spill]] %s3476_s5 }
   0x7   :  { %3514 = sst [smem:[#allocation38_spill]] %s3477_s6 }
   0x8   :  { %3515 = sst [smem:[#allocation39_spill]] %s3478_s7 }
   0x9   :  { %3516 = sst [smem:[#allocation40_spill]] %s3479_s8 }
   0xa   :  { %3517 = sst [smem:[#allocation41_spill]] %s3480_s9 }
   0xb   :  { %3518 = sst [smem:[#allocation42_spill]] %s3481_s10 }
   0xc   :  { %3519 = sst [smem:[#allocation43_spill]] %s3482_s11 }
   0xd   :  { %3520 = sst [smem:[#allocation44_spill]] %s3485_s14 }
   0xe   :  { %3521 = sst [smem:[#allocation45_spill]] %s3489_s18 }
   0xf   :  { %3522 = sst [smem:[#allocation46_spill]] %s3497_s26 }
  0x10   :  { %3523 = sst [smem:[#allocation47_spill]] %s3498_s27 }
  0x11   :  { %32 = vsyncpa [#allocation4], 0 }
  0x12   :  { %33 = vsyncpa [#allocation7], 0 }
  0x13   :  { %34 = vsyncpa [#allocation10], 0 }
  0x14   :  { %35 = vsyncpa [#allocation13], 0 }
  0x15   :  { %36 = vsyncpa [#allocation16], 0 }
  0x16   :  { %37 = vsyncpa [#allocation5], 0 }
  0x17   :  { %39 = vsyncpa [#allocation5 + $0x1], 0  ;;  %s3114_s7 = smov 0   ;;  %s3116_s4 = smov 0  }
  0x18   :  { %s3118_s8 = smov 0   ;;  %s3120_s30 = smov 0  }
  0x19 LB: > { %3524 = sst [smem:[#allocation25_spill]] %s2947_s7  ;;  %s3135_s9 = sadd.s32 4294967295, %s2959_s30   ;;  %s2959_s30 = sphi %s3120_s30, %s3555_s30   ;;  %s2955_s8 = sphi %s3118_s8, %s3557_s8   ;;  %s2951_s4 = sphi %s3116_s4, %s3559_s4   ;;  %s2947_s7 = sphi %s3114_s7, %s3558_s7  }
  0x1a   : > { %3525 = sst [smem:[#allocation26_spill]] %s2955_s8  ;;  %s2308_s5 = sadd.s32 4294967294, %s2959_s30  }
  0x1b   : > { %3526 = sst [smem:[#allocation27_spill]] %s2959_s30  ;;  %s3139_s28 = sadd.s32 1, %s2959_s30  }
  0x1c   : > { %3527 = sst [smem:[#allocation28_spill]] %s3139_s28  ;;  %s624_s0 = sadd.s32 1, %s2955_s8 }
  0x1d   : > { %s621_s10 = ssub.s32 %s2959_s30, %s3139_s28  ;;  %p634_p0 = scmp.ne.s32.totalorder %s2955_s8, %s2951_s4 }
  0x1e   : > { %p622_p1 = scmp.eq.s32.totalorder %s621_s10, 0  ;;  %p635_p2 = scmp.eq.s32.totalorder %s3135_s9, 1 }
  0x1f   : > { %p640_p3 = scmp.ne.s32.totalorder %s2951_s4, %s2947_s7  ;;  %p641_p4 = scmp.eq.s32.totalorder %s2308_s5, 1 }
  0x20   : > { %s3150_s29 = scalar_select %p622_p1, %s2955_s8, %s624_s0  }
  0x21   : > { %p3152_p5 = por %p635_p2, %p634_p0  ;;  %p3156_p6 = por %p641_p4, %p640_p3 }
  0x22   : > { %3528 = sst [smem:[#allocation29_spill]] %s3150_s29  ;;  %p2309_p7 = scmp.ge.s32.totalorder %s2959_s30, 1 }
  0x23   : > { %s3529_s1 = scalar_select %p3152_p5, 1, 0 }
  0x24   : > { %s3531_s6 = scalar_select %p3156_p6, 1, 0 }
  0x25   : > { %3530 = sst [smem:[#allocation30_spill]] %s3529_s1  ;;  %p648_p8 = scmp.lt.s32.totalorder %s2959_s30, 3 }
  0x26   : > { %3532 = sst [smem:[#allocation31_spill]] %s3531_s6  ;;  %p2464_p9 = scmp.eq.s32.totalorder %s3135_s9, 0 }
  0x27   : > { %p3163_p10 = pnand %p2309_p7, %p648_p8  ;;  %s3534_s5 = sld [smem:[#allocation38_spill]] }
  0x28   : > { %s2961_s10 = smov [#allocation6]   ;;  %s3535_s6 = sld [smem:[#allocation42_spill]] }
  0x29   : > { %p2432_p11 = pneg %p3163_p10  ;;  %s686_s29 = sshll.u32 %s2961_s10, 4  ;;  %s687_s29 = int_to_ptr.vmem [resolvable:$true] %s686_s29 }
  0x2a   : > { %s3537_s14 = sld [smem:[#allocation44_spill]]  ;;  %s2962_s1 = smov [#allocation9]  }
  0x2b   : > { %p3177_p12 = pnand %p2464_p9, %p2432_p11  ;;  %s716_s10 = sshll.u32 %s2962_s1, 4  ;;  %s717_s10 = int_to_ptr.vmem [resolvable:$true] %s716_s10 }
  0x2c   : > { %s3538_s18 = sld [smem:[#allocation45_spill]]  ;;  %s2963_s26 = smov [#allocation12]  }
  0x2d   : > { %s684_s0 = sshll.u32 %s3534_s5, 4  ;;  %s746_s27 = sshll.u32 %s2963_s26, 4  ;;  %s685_s0 = int_to_ptr.hbm [resolvable:$true] %s684_s0  ;;  %s747_s27 = int_to_ptr.vmem [resolvable:$true] %s746_s27 }
  0x2e   : > { %s714_s7 = sshll.u32 %s3535_s6, 4  ;;  %s2964_s2 = smov [#allocation15]   ;;  %s715_s7 = int_to_ptr.hbm [resolvable:$true] %s714_s7 }
  0x2f   : > { %2438 = dma.hbm_to_vmem [thread:$0]  (!%p3177_p12), %s685_s0, 16, %s687_s29, [#allocation7]  }
  0x30   : > { %s744_s5 = sshll.u32 %s3537_s14, 4  ;;  %s776_s1 = sshll.u32 %s2964_s2, 4  ;;  %s745_s5 = int_to_ptr.hbm [resolvable:$true] %s744_s5  ;;  %s777_s1 = int_to_ptr.vmem [resolvable:$true] %s776_s1 }
  0x31   : > { %2444 = dma.hbm_to_vmem [thread:$0]  (!%p3177_p12), %s715_s7, 16, %s717_s10, [#allocation10]  }
  0x32   : > { %s774_s6 = sshll.u32 %s3538_s18, 4  ;;  %s3539_s29 = sld [smem:[#allocation36_spill]]  ;;  %s775_s6 = int_to_ptr.hbm [resolvable:$true] %s774_s6 }
  0x33   : > { %2450 = dma.hbm_to_vmem [thread:$0]  (!%p3177_p12), %s745_s5, 16, %s747_s27, [#allocation13]  }
  0x34   : > { %2456 = dma.hbm_to_vmem [thread:$0]  (!%p3177_p12), %s775_s6, 16, %s777_s1, [#allocation16]  }
  0x35   : > { %s3540_s8 = sld [smem:[#allocation40_spill]]  ;;  %s2965_s26 = smov [#allocation3]  }
  0x36   : > { %s671_s18 = sshll.u32 %s2965_s26, 4  ;;  %s2966_s27 = smov [#allocation8]   ;;  %s672_s18 = int_to_ptr.vmem [resolvable:$true] %s671_s18 }
  0x37   : > { %s701_s14 = sshll.u32 %s2966_s27, 4  ;;  %s729_s3 = sshll.u32 %s3483_s12, 4  ;;  %s702_s14 = int_to_ptr.vmem [resolvable:$true] %s701_s14  ;;  %s730_s3 = int_to_ptr.hbm [resolvable:$true] %s729_s3 }
  0x38   : > { %s669_s0 = sshll.u32 %s3539_s29, 4  ;;  %s759_s29 = sshll.u32 %s3487_s16, 4  ;;  %s670_s0 = int_to_ptr.hbm [resolvable:$true] %s669_s0  ;;  %s760_s29 = int_to_ptr.hbm [resolvable:$true] %s759_s29 }
  0x39   : > { %2435 = dma.hbm_to_vmem [thread:$0]  (!%p3177_p12), %s670_s0, 16, %s672_s18, [#allocation4]  }
  0x3a   : > { %s2967_s7 = smov [#allocation11]   ;;  %s2968_s18 = smov [#allocation14]  }
  0x3b   : > { %s699_s28 = sshll.u32 %s3540_s8, 4  ;;  %s731_s10 = sshll.u32 %s2967_s7, 4  ;;  %s700_s28 = int_to_ptr.hbm [resolvable:$true] %s699_s28  ;;  %s732_s10 = int_to_ptr.vmem [resolvable:$true] %s731_s10 }
  0x3c   : > { %2441 = dma.hbm_to_vmem [thread:$0]  (!%p3177_p12), %s700_s28, 16, %s702_s14, [#allocation7]  }
  0x3d   : > { %2447 = dma.hbm_to_vmem [thread:$0]  (!%p3177_p12), %s730_s3, 16, %s732_s10, [#allocation10]  }
  0x3e   : > { %s761_s0 = sshll.u32 %s2968_s18, 4  ;;  %s804_s27 = sshll.u32 %s3496_s25, 4  ;;  %s762_s0 = int_to_ptr.vmem [resolvable:$true] %s761_s0  ;;  %s805_s27 = int_to_ptr.hbm [resolvable:$true] %s804_s27 }
  0x3f   : > { %2453 = dma.hbm_to_vmem [thread:$0]  (!%p3177_p12), %s760_s29, 16, %s762_s0, [#allocation13]  }
  0x40   : > { %s2969_s28 = smov [#allocation17]   ;;  %830 = sbr.rel (%p3163_p10) target bundleno = 2908 (0xb5c), region = 128 }
  0x41   : > { %s806_s14 = sshll.u32 %s2969_s28, 4  ;;  %s807_s14 = int_to_ptr.vmem [resolvable:$true] %s806_s14 }
  0x42   : > { %2459 = dma.hbm_to_vmem [thread:$0]  (!%p3177_p12), %s805_s27, 128, %s807_s14, [#allocation16]  }
  0x45   : > { %2922 = dma.done.wait (%p2464_p9), [#allocation4], 16  }
  0x46   : > { %2924 = vsyncadd (%p2464_p9), [#allocation4], 4294967280 }
  0x47   : > { %2926 = dma.done.wait (%p2464_p9), [#allocation7], 32  }
  0x48   : > { %2928 = vsyncadd (%p2464_p9), [#allocation7], 4294967264 }
  0x49   : > { %2930 = dma.done.wait (%p2464_p9), [#allocation10], 32  }
  0x4a   : > { %2932 = vsyncadd (%p2464_p9), [#allocation10], 4294967264 }
  0x4b   : > { %2934 = dma.done.wait (%p2464_p9), [#allocation13], 32  }
  0x4c   : > { %2936 = vsyncadd (%p2464_p9), [#allocation13], 4294967264 }
  0x4d   : > { %2938 = dma.done.wait (%p2464_p9), [#allocation16], 144  }
  0x4e   : > { %2940 = vsyncadd (%p2464_p9), [#allocation16], 4294967152  ;;  %s3541_s5 = sld [smem:[#allocation33_spill]]  ;;  %s2970_s2 = smov 96   ;;  %vm948_vm0 = vcmask 64512   ;;  %v2972_v1 = vmov 0.0  }
  0x4f   : > { %s2971_s3 = smov 112   ;;  %p943_p13 = scmp.lt.s32.totalorder %s3135_s9, 1  ;;  %950 = vst.msk [vmem:[#allocation2 + $0x8] sm:$0xff] %vm948_vm0, %v2972_v1 }
  0x50   : > { %s3542_s10 = sld [smem:[#allocation32_spill]]  ;;  %951 = vst.msk [vmem:[#allocation2 + $0x10] sm:$0xff] %vm948_vm0, %v2972_v1  ;;  %s2973_s27 = smov 120  }
  0x51   : > { %s944_s6 = scalar_select %p943_p13, %s3135_s9, 1  ;;  %949 = vst.msk [vmem:[#allocation2] sm:$0xff] %vm948_vm0, %v2972_v1 }
  0x52   : > { %952 = vst.msk [vmem:[#allocation2 + $0x18] sm:$0xff] %vm948_vm0, %v2972_v1  ;;  %s3543_s26 = sld [smem:[#allocation34_spill]] }
  0x53   : > { %s2393_s1 = sshll.u32 %s944_s6, 5  ;;  %953 = vst.msk [vmem:[#allocation2 + $0x20] sm:$0xff] %vm948_vm0, %v2972_v1  ;;  %s3544_s30 = sld [smem:[#allocation35_spill]] }
  0x54   : > { %v976_v0 = vld [vmem:[%s3541_s5] sm:$0xff]  ;;  %954 = vst.msk [vmem:[#allocation2 + $0x28] sm:$0xff] %vm948_vm0, %v2972_v1  ;;  %s3545_s6 = sld [smem:[#allocation37_spill]]  ;;  %s2390_s5 = sshll.u32 %s3135_s9, 3 }
  0x55   : > { %1074 = vrot.lane.b32.xlu0 %v976_v0, %s2970_s2  ;;  %1004 = vmatpush.msra.mxu0 %v976_v0  ;;  %s3546_s7 = sld [smem:[#allocation39_spill]] }
  0x56   : > { %s947_s18 = scalar_lea.vmem %s3542_s10, %s2393_s1  ;;  %s3547_s0 = sld [smem:[#allocation41_spill]] }
  0x57   : > { %v955_v2 = vld [vmem:[%s947_s18] sm:$0xff]  ;;  %v956_v3 = vld [vmem:[%s947_s18 + $0x8] sm:$0xff]  ;;  %v957_v4 = vld [vmem:[%s947_s18 + $0x10] sm:$0xff]  ;;  %s3548_s28 = sld [smem:[#allocation43_spill]] }
  0x58   : > { %959 = vst.msk [vmem:[#allocation2 + $0x8] sm:$0xff] %vm948_vm0, %v955_v2  ;;  %v958_v6 = vld [vmem:[%s947_s18 + $0x18] sm:$0xff]  ;;  %v2528_v21 = vld [vmem:[%s3543_s26] ss:$0 sm:$0xff]  ;;  %s3549_s29 = sld [smem:[#allocation47_spill]] }
  0x59   : > { %960 = vst.msk [vmem:[#allocation2 + $0x10] sm:$0xff] %vm948_vm0, %v956_v3 }
  0x5a   : > { %961 = vst.msk [vmem:[#allocation2 + $0x18] sm:$0xff] %vm948_vm0, %v957_v4 }
  0x5b   : > { %962 = vst.msk [vmem:[#allocation2 + $0x20] sm:$0xff] %vm948_vm0, %v958_v6 }
  0x5d   : > { %1026 = vrot.lane.b32.xlu0 %v976_v0, %s2971_s3 }
  0x5f   : > { %v963_v5 = vld [vmem:[#allocation2 + $0x7] sm:$0xff] }
  0x60   : > { %2333 = vmatmul.msk.f32.vlgmr.msra.gmra.mxu0 %vm948_vm0, %v963_v5  ;;  %v964_v7 = vld [vmem:[#allocation2 + $0xf] sm:$0xff] }
  0x61   : > { %v965_v8 = vld [vmem:[#allocation2 + $0x17] sm:$0xff]  ;;  %v971_v10 = vld [vmem:[#allocation2 + $0x9] sm:$0xff] }
  0x62   : > { %v966_v9 = vld [vmem:[#allocation2 + $0x1f] sm:$0xff]  ;;  %v3273_v12 = vld [vmem:[#allocation2 + $0x8] sm:$0xff]  ;;  %v972_v13 = vld [vmem:[#allocation2 + $0x11] sm:$0xff] }
  0x63   : > { %v3278_v15 = vld [vmem:[#allocation2 + $0x10] sm:$0xff]  ;;  %v973_v16 = vld [vmem:[#allocation2 + $0x19] sm:$0xff]  ;;  %v974_v18 = vld [vmem:[#allocation2 + $0x21] sm:$0xff] }
  0x64   : > { %v3283_v17 = vld [vmem:[#allocation2 + $0x18] sm:$0xff]  ;;  %v3288_v19 = vld [vmem:[#allocation2 + $0x20] sm:$0xff] }
  0x68   : > { %2334 = vmatmul.msk.f32.gmra.mxu0 %vm948_vm0, %v964_v7 }
  0x70   : > { %2335 = vmatmul.msk.f32.gmra.mxu0 %vm948_vm0, %v965_v8 }
  0x78   : > { %2336 = vmatmul.msk.f32.gmra.mxu0 %vm948_vm0, %v966_v9 }
  0xc7   : > { %v1075_v11 = vpop.permute.xlu0 %1074 }
  0xc8   : > { %1104 = vmatpush.msra.mxu2 %v1075_v11 }
  0xc9   : > { %2341 = vmatmul.msk.f32.vlgmr.msra.gmra.mxu2 %vm948_vm0, %v971_v10 }
  0xcf   : > { %v1027_v14 = vpop.permute.xlu0 %1026 }
  0xd0   : > { %1056 = vmatpush.msra.mxu1 %v1027_v14 }
  0xd1   : > { %2337 = vmatmul.msk.f32.vlgmr.msra.gmra.mxu1 %vm948_vm0, %v3273_v12  ;;  %2342 = vmatmul.msk.f32.gmra.mxu2 %vm948_vm0, %v972_v13 }
  0xd9   : > { %2338 = vmatmul.msk.f32.gmra.mxu1 %vm948_vm0, %v3278_v15  ;;  %2343 = vmatmul.msk.f32.gmra.mxu2 %vm948_vm0, %v973_v16 }
  0xdd   : > { %v1006_v20 = vpop.f32.mrf.mxu0 }
  0xde   : > { %v1021_v22 = vadd.f32 %v2528_v21, %v1006_v20 }
  0xe1   : > { %2339 = vmatmul.msk.f32.gmra.mxu1 %vm948_vm0, %v3283_v17  ;;  %2344 = vmatmul.msk.f32.gmra.mxu2 %vm948_vm0, %v974_v18 }
  0xe5   : > { %v1009_v24 = vpop.f32.mrf.mxu0 }
  0xe6   : > { %v1022_v29 = vadd.f32 %v2528_v21, %v1009_v24 }
  0xe9   : > { %2340 = vmatmul.msk.f32.gmra.mxu1 %vm948_vm0, %v3288_v19 }
  0xed   : > { %v1012_v32 = vpop.f32.mrf.mxu0 }
  0xee   : > { %v1023_v37 = vadd.f32 %v2528_v21, %v1012_v32 }
  0xf5   : > { %v1015_v42 = vpop.f32.mrf.mxu0 }
  0xf6   : > { %v1024_v46 = vadd.f32 %v2528_v21, %v1015_v42 }
 0x14c   : > { %v1106_v23 = vpop.f32.mrf.mxu2 }
 0x14e   : > { %v1058_v25 = vpop.f32.mrf.mxu1 }
 0x14f   : > { %v1070_v26 = vadd.f32 %v1058_v25, %v1021_v22 }
 0x151   : > { %v3295_v27 = vadd.f32 %v1106_v23, %v1070_v26 }
 0x153   : > { %v2345_v28 = vmul.f32 -1.442695, %v3295_v27 }
 0x154   : > { %v1109_v30 = vpop.f32.mrf.mxu2 }
 0x155   : > { %2541 = vpow2.f32 %v2345_v28 }
 0x156   : > { %v1061_v31 = vpop.f32.mrf.mxu1 }
 0x157   : > { %v1071_v33 = vadd.f32 %v1061_v31, %v1022_v29 }
 0x159   : > { %v3298_v34 = vadd.f32 %v1109_v30, %v1071_v33 }
 0x15b   : > { %v2542_v35 = vpop.eup %2541  ;;  %v2346_v36 = vmul.f32 -1.442695, %v3298_v34 }
 0x15c   : > { %v1138_v38 = vadd.f32 1.0, %v2542_v35  ;;  %v1112_v39 = vpop.f32.mrf.mxu2 }
 0x15d   : > { %2543 = vpow2.f32 %v2346_v36 }
 0x15e   : > { %2545 = vrcp.f32 %v1138_v38  ;;  %v1064_v40 = vpop.f32.mrf.mxu1  ;;  %v1153_v54 = vand.u32 2147483648, %v1138_v38  ;;  %v1151_v57 = vand.u32 2147483647, %v1138_v38  ;;  %vm1147_vm2 = vweird.f32 %v1138_v38 }
 0x15f   : > { %v1072_v41 = vadd.f32 %v1064_v40, %v1023_v37  ;;  %v1222_v40 = vld [vmem:[%s3544_s30] sm:$0xff] }
 0x160   : > { %v1154_v63 = vor.u32 1.1754944e-38, %v1153_v54  ;;  %vm1152_vm4 = vcmp.eq.f32.partialorder %v1151_v57, 8.507059e+37  ;;  %1254 = vmatpush.msra.mxu3 %v1222_v40 }
 0x161   : > { %v3301_v43 = vadd.f32 %v1112_v39, %v1072_v41  ;;  %v1293_v41 = vld [vmem:[%s3545_s6] sm:$0xff] }
 0x162   : > { %1363 = vrot.lane.b32.xlu0 %v1293_v41, %s2970_s2  ;;  %1315 = vmatpush.msrb.mxu0 %v1293_v41 }
 0x163   : > { %v2544_v44 = vpop.eup %2543  ;;  %v2347_v45 = vmul.f32 -1.442695, %v3301_v43 }
 0x164   : > { %v2546_v47 = vpop.eup %2545  ;;  %v1139_v48 = vadd.f32 1.0, %v2544_v44  ;;  %v1115_v51 = vpop.f32.mrf.mxu2 }
 0x165   : > { %2547 = vpow2.f32 %v2347_v45  ;;  %v1143_v49 = vmul.f32 %v2546_v47, %v1138_v38  ;;  %vm1148_vm1 = vweird.f32 %v2546_v47 }
 0x166   : > { %2549 = vrcp.f32 %v1139_v48  ;;  %v1067_v50 = vpop.f32.mrf.mxu1  ;;  %vm1149_vm3 = vmor %vm1147_vm2, %vm1148_vm1  ;;  %v1168_v5 = vand.u32 2147483648, %v1139_v48  ;;  %v1166_v7 = vand.u32 2147483647, %v1139_v48  ;;  %vm1162_vm6 = vweird.f32 %v1139_v48 }
 0x167   : > { %v1073_v52 = vadd.f32 %v1067_v50, %v1024_v46  ;;  %v1144_v53 = vsub.f32 1.0, %v1143_v49 }
 0x168   : > { %v1169_v13 = vor.u32 1.1754944e-38, %v1168_v5  ;;  %vm1167_vm8 = vcmp.eq.f32.partialorder %v1166_v7, 8.507059e+37 }
 0x169   : > { %v3304_v55 = vadd.f32 %v1115_v51, %v1073_v52  ;;  %v1145_v56 = vmul.f32 %v2546_v47, %v1144_v53 }
 0x16b   : > { %v2548_v58 = vpop.eup %2547  ;;  %v2348_v59 = vmul.f32 -1.442695, %v3304_v55  ;;  %v1146_v60 = vadd.f32 %v2546_v47, %v1145_v56  ;;  %v2529_v56 = vld [vmem:[#allocation3] ss:$0 sm:$0xff] }
 0x16c   : > { %v2550_v61 = vpop.eup %2549  ;;  %v1140_v62 = vadd.f32 1.0, %v2548_v58 }
 0x16d   : > { %2551 = vpow2.f32 %v2348_v59  ;;  %v1150_v0 = vsel %vm1149_vm3, %v2546_v47, %v1146_v60  ;;  %v1158_v2 = vmul.f32 %v2550_v61, %v1139_v48  ;;  %vm1163_vm5 = vweird.f32 %v2550_v61 }
 0x16e   : > { %2553 = vrcp.f32 %v1140_v62  ;;  %v1155_v3 = vsel %vm1152_vm4, %v1154_v63, %v1150_v0  ;;  %vm1164_vm7 = vmor %vm1162_vm6, %vm1163_vm5  ;;  %v1183_v20 = vand.u32 2147483648, %v1140_v62  ;;  %vm1177_vm9 = vweird.f32 %v1140_v62 }
 0x16f   : > { %1206 = vrot.lane.b32.xlu1 %v1155_v3, %s2973_s27  ;;  %v1159_v4 = vsub.f32 1.0, %v1158_v2  ;;  %v1181_v22 = vand.u32 2147483647, %v1140_v62  ;;  %v1270_v63 = vmul.f32 0.70710677, %v3283_v17 }
 0x170   : > { %v1184_v24 = vor.u32 1.1754944e-38, %v1183_v20 }
 0x171   : > { %v1160_v6 = vmul.f32 %v2550_v61, %v1159_v4  ;;  %vm1182_vm12 = vcmp.eq.f32.partialorder %v1181_v22, 8.507059e+37 }
 0x173   : > { %v2552_v8 = vpop.eup %2551  ;;  %v1161_v9 = vadd.f32 %v2550_v61, %v1160_v6 }
 0x174   : > { %v2554_v10 = vpop.eup %2553  ;;  %v1141_v11 = vadd.f32 1.0, %v2552_v8 }
 0x175   : > { %v1165_v14 = vsel %vm1164_vm7, %v2550_v61, %v1161_v9  ;;  %v1173_v16 = vmul.f32 %v2554_v10, %v1140_v62  ;;  %vm1178_vm10 = vweird.f32 %v2554_v10 }
 0x176   : > { %2555 = vrcp.f32 %v1141_v11  ;;  %v1170_v18 = vsel %vm1167_vm8, %v1169_v13, %v1165_v14  ;;  %vm1179_vm11 = vmor %vm1177_vm9, %vm1178_vm10  ;;  %v1198_v31 = vand.u32 2147483648, %v1141_v11  ;;  %vm1192_vm13 = vweird.f32 %v1141_v11 }
 0x177   : > { %1208 = vrot.lane.b32.xlu1 %v1170_v18, %s2973_s27  ;;  %v1174_v21 = vsub.f32 1.0, %v1173_v16  ;;  %v1196_v33 = vand.u32 2147483647, %v1141_v11  ;;  %2557 = vtanh.f32 %v3295_v27 }
 0x178   : > { %v1199_v36 = vor.u32 1.1754944e-38, %v1198_v31  ;;  %2559 = vtanh.f32 %v3298_v34 }
 0x179   : > { %v1175_v23 = vmul.f32 %v2554_v10, %v1174_v21  ;;  %vm1197_vm1 = vcmp.eq.f32.partialorder %v1196_v33, 8.507059e+37  ;;  %2561 = vtanh.f32 %v3301_v43  ;;  %v1268_v43 = vmul.f32 0.70710677, %v3273_v12 }
 0x17a   : > { %2563 = vtanh.f32 %v3304_v55  ;;  %v1269_v55 = vmul.f32 0.70710677, %v3278_v15  ;;  %v1271_v15 = vmul.f32 0.70710677, %v3288_v19  ;;  %v2530_v19 = vld [vmem:[#allocation6] ss:$0 sm:$0xff] }
 0x17b   : > { %v1176_v25 = vadd.f32 %v2554_v10, %v1175_v23 }
 0x17c   : > { %v2556_v26 = vpop.eup %2555 }
 0x17d   : > { %v1180_v28 = vsel %vm1179_vm11, %v2554_v10, %v1176_v25  ;;  %v1188_v29 = vmul.f32 %v2556_v26, %v1141_v11  ;;  %vm1193_vm14 = vweird.f32 %v2556_v26  ;;  %v2558_v42 = vpop.eup %2557 }
 0x17e   : > { %v1185_v30 = vsel %vm1182_vm12, %v1184_v24, %v1180_v28  ;;  %vm1194_vm15 = vmor %vm1192_vm13, %vm1193_vm14  ;;  %v2560_v46 = vpop.eup %2559 }
 0x17f   : > { %1210 = vrot.lane.b32.xlu2 %v1185_v30, %s2973_s27  ;;  %v1189_v32 = vsub.f32 1.0, %v1188_v29  ;;  %1329 = vrot.lane.b32.xlu1 %v1293_v41, %s2971_s3  ;;  %v2562_v50 = vpop.eup %2561 }
 0x180   : > { %v2564_v52 = vpop.eup %2563 }
 0x181   : > { %v1190_v35 = vmul.f32 %v2556_v26, %v1189_v32 }
 0x183   : > { %v1191_v37 = vadd.f32 %v2556_v26, %v1190_v35 }
 0x185   : > { %v1195_v38 = vsel %vm1194_vm15, %v2556_v26, %v1191_v37 }
 0x186   : > { %v1200_v39 = vsel %vm1197_vm1, %v1199_v36, %v1195_v38 }
 0x187   : > { %1212 = vrot.lane.b32.xlu2 %v1200_v39, %s2973_s27 }
 0x1d4   : > { %v1364_v34 = vpop.permute.xlu0 %1363 }
 0x1d5   : > { %1387 = vmatpush.msrb.mxu2 %v1364_v34 }
 0x1d9   : > { %v1211_v49 = vpop.permute.xlu2 %1210 }
 0x1da   : > { %v1220_v51 = vmul.f32 %v2562_v50, %v1211_v49 }
 0x1e1   : > { %v1207_v44 = vpop.permute.xlu1 %1206  ;;  %v1213_v27 = vpop.permute.xlu2 %1212 }
 0x1e2   : > { %v1218_v45 = vmul.f32 %v2558_v42, %v1207_v44  ;;  %v1221_v53 = vmul.f32 %v2564_v52, %v1213_v27 }
 0x1e4   : > { %2349 = vmatmul.msk.f32.vlgmr.msra.gmra.mxu3 %vm948_vm0, %v1218_v45 }
 0x1e9   : > { %v1209_v47 = vpop.permute.xlu1 %1208 }
 0x1ea   : > { %v1219_v48 = vmul.f32 %v2560_v46, %v1209_v47 }
 0x1ec   : > { %2350 = vmatmul.msk.f32.gmra.mxu3 %vm948_vm0, %v1219_v48 }
 0x1f1   : > { %v1330_v54 = vpop.permute.xlu1 %1329 }
 0x1f2   : > { %1353 = vmatpush.msrb.mxu1 %v1330_v54  ;;  %v1447_v54 = vld [vmem:[%s3546_s7] sm:$0xff]  ;;  %s2156_s7 = scalar_lea.hbm %s3549_s29, %s2390_s5 }
 0x1f3   : > { %1473 = vmatpush.msrb.mxu3 %v1447_v54  ;;  %s2160_s26 = sshll.u32 %s2156_s7, 4  ;;  %s2161_s26 = int_to_ptr.hbm [resolvable:$true] %s2160_s26 }
 0x1f4   : > { %2351 = vmatmul.msk.f32.gmra.mxu3 %vm948_vm0, %v1220_v51  ;;  %s2891_s9 = sshra.s32 %s2161_s26, 4  ;;  %s2892_s9 = int_to_ptr.hbm [resolvable:$true] %s2891_s9 }
 0x1f5   : > { %s2893_s14 = scalar_lea.hbm %s2892_s9, 8  ;;  %p2898_p3 = scmp.lt.s32.totalorder %s2892_s9, %s3549_s29 }
 0x1f6   : > { %p2894_p0 = scmp.ne.s32.totalorder %s2892_s9, %s2893_s14 }
 0x1f8   : > { %p2895_p1 = pnand %p2894_p0, %p3152_p5 }
 0x1fa   : > { %p2896_p2 = pneg %p2895_p1 }
 0x1fc   : > { %2352 = vmatmul.msk.f32.gmra.mxu3 %vm948_vm0, %v1221_v53 }
 0x267   : > { %v1256_v57 = vpop.f32.mrf.mxu3 }
 0x268   : > { %v1257_v58 = vadd.f32 %v2529_v56, %v1256_v57 }
 0x26a   : > { %v1272_v59 = vadd.f32 %v1268_v43, %v1257_v58  ;;  %v1492_v58 = vld [vmem:[%s3547_s0] sm:$0xff]  ;;  %s3550_s0 = sld [smem:[#allocation46_spill]] }
 0x26b   : > { %1562 = vrot.lane.b32.xlu1 %v1492_v58, %s2970_s2  ;;  %1514 = vmatpush.msra.mxu0 %v1492_v58 }
 0x26c   : > { %1276 = vst.msk [vmem:[#allocation2 + $0x8] sm:$0xff] %vm948_vm0, %v1272_v59 }
 0x26f   : > { %v1259_v60 = vpop.f32.mrf.mxu3 }
 0x270   : > { %v1260_v61 = vadd.f32 %v2529_v56, %v1259_v60 }
 0x272   : > { %v1273_v62 = vadd.f32 %v1269_v55, %v1260_v61 }
 0x274   : > { %1277 = vst.msk [vmem:[#allocation2 + $0x10] sm:$0xff] %vm948_vm0, %v1273_v62 }
 0x277   : > { %v1262_v0 = vpop.f32.mrf.mxu3 }
 0x278   : > { %v1263_v2 = vadd.f32 %v2529_v56, %v1262_v0 }
 0x27a   : > { %v1274_v3 = vadd.f32 %v1270_v63, %v1263_v2  ;;  %v2531_v63 = vld [vmem:[#allocation8] ss:$0 sm:$0xff] }
 0x27b   : > { %v1281_v4 = vld [vmem:[#allocation2 + $0x7] ss:$2 sm:$0xff]  ;;  %v1285_v5 = vld [vmem:[#allocation2 + $0x8] ss:$2 sm:$0xff] }
 0x27c   : > { %v1289_v12 = vld [vmem:[#allocation2 + $0x9] ss:$2 sm:$0xff]  ;;  %1278 = vst.msk [vmem:[#allocation2 + $0x18] sm:$0xff] %vm948_vm0, %v1274_v3  ;;  %2353 = vmatmul.msk.f32.vlgmr.msrb.gmra.mxu0 %vm948_vm0, %v1281_v4  ;;  %2355 = vmatmul.msk.f32.vlgmr.msrb.gmra.mxu1 %vm948_vm0, %v1285_v5 }
 0x27d   : > { %2357 = vmatmul.msk.f32.vlgmr.msrb.gmra.mxu2 %vm948_vm0, %v1289_v12 }
 0x27f   : > { %v1265_v6 = vpop.f32.mrf.mxu3 }
 0x280   : > { %v1266_v7 = vadd.f32 %v2529_v56, %v1265_v6 }
 0x282   : > { %v1275_v8 = vadd.f32 %v1271_v15, %v1266_v7 }
 0x284   : > { %1279 = vst.msk [vmem:[#allocation2 + $0x20] sm:$0xff] %vm948_vm0, %v1275_v8 }
 0x28b   : > { %v1283_v17 = vld [vmem:[#allocation2 + $0x17] ss:$2 sm:$0xff]  ;;  %v1287_v9 = vld [vmem:[#allocation2 + $0x18] ss:$2 sm:$0xff] }
 0x28c   : > { %v1291_v10 = vld [vmem:[#allocation2 + $0x19] ss:$2 sm:$0xff]  ;;  %2354 = vmatmul.msk.f32.gmra.mxu0 %vm948_vm0, %v1283_v17  ;;  %2356 = vmatmul.msk.f32.gmra.mxu1 %vm948_vm0, %v1287_v9  ;;  %v2532_v17 = vld [vmem:[#allocation9] ss:$0 sm:$0xff] }
 0x28d   : > { %1483 = vst.msk [vmem:[#allocation2 + $0x18] sm:$0xff] %vm948_vm0, %v2972_v1  ;;  %2358 = vmatmul.msk.f32.gmra.mxu2 %vm948_vm0, %v1291_v10 }
 0x28e   : > { %1484 = vst.msk [vmem:[#allocation2 + $0x20] sm:$0xff] %vm948_vm0, %v2972_v1 }
 0x2dd   : > { %v1563_v62 = vpop.permute.xlu1 %1562 }
 0x2de   : > { %1586 = vmatpush.msra.mxu2 %v1563_v62 }
 0x2f9   : > { %v1317_v11 = vpop.f32.mrf.mxu0  ;;  %v1355_v14 = vpop.f32.mrf.mxu1 }
 0x2fa   : > { %v1326_v13 = vadd.f32 %v2530_v19, %v1317_v11 }
 0x2fc   : > { %v1361_v16 = vadd.f32 %v1355_v14, %v1326_v13 }
 0x300   : > { %v1389_v18 = vpop.f32.mrf.mxu2 }
 0x301   : > { %v1395_v20 = vadd.f32 %v1389_v18, %v1361_v16 }
 0x303   : > { %v2359_v21 = vmul.f32 -1.442695, %v1395_v20 }
 0x305   : > { %2565 = vpow2.f32 %v2359_v21 }
 0x309   : > { %v1320_v22 = vpop.f32.mrf.mxu0  ;;  %v1358_v26 = vpop.f32.mrf.mxu1 }
 0x30a   : > { %v1327_v24 = vadd.f32 %v2530_v19, %v1320_v22 }
 0x30b   : > { %v2566_v23 = vpop.eup %2565 }
 0x30c   : > { %v1405_v25 = vadd.f32 1.0, %v2566_v23  ;;  %v1362_v28 = vadd.f32 %v1358_v26, %v1327_v24  ;;  %v1646_v23 = vld [vmem:[%s3548_s28] sm:$0xff] }
 0x30d   : > { %1672 = vmatpush.msra.mxu3 %v1646_v23 }
 0x30e   : > { %2567 = vrcp.f32 %v1405_v25  ;;  %v1418_v36 = vand.u32 2147483648, %v1405_v25  ;;  %v1416_v38 = vand.u32 2147483647, %v1405_v25  ;;  %vm1412_vm3 = vweird.f32 %v1405_v25 }
 0x310   : > { %v1392_v29 = vpop.f32.mrf.mxu2  ;;  %v1419_v42 = vor.u32 1.1754944e-38, %v1418_v36  ;;  %vm1417_vm5 = vcmp.eq.f32.partialorder %v1416_v38, 8.507059e+37 }
 0x311   : > { %v1396_v30 = vadd.f32 %v1392_v29, %v1362_v28 }
 0x313   : > { %v2360_v31 = vmul.f32 -1.442695, %v1396_v30 }
 0x314   : > { %v2568_v32 = vpop.eup %2567 }
 0x315   : > { %2569 = vpow2.f32 %v2360_v31  ;;  %v1408_v33 = vmul.f32 %v2568_v32, %v1405_v25  ;;  %vm1413_vm2 = vweird.f32 %v2568_v32 }
 0x316   : > { %vm1414_vm4 = vmor %vm1412_vm3, %vm1413_vm2 }
 0x317   : > { %v1409_v35 = vsub.f32 1.0, %v1408_v33 }
 0x319   : > { %v1410_v37 = vmul.f32 %v2568_v32, %v1409_v35 }
 0x31b   : > { %v2570_v39 = vpop.eup %2569  ;;  %v1411_v40 = vadd.f32 %v2568_v32, %v1410_v37 }
 0x31c   : > { %v1406_v41 = vadd.f32 1.0, %v2570_v39 }
 0x31d   : > { %v1415_v44 = vsel %vm1414_vm4, %v2568_v32, %v1411_v40 }
 0x31e   : > { %2571 = vrcp.f32 %v1406_v41  ;;  %v1420_v45 = vsel %vm1417_vm5, %v1419_v42, %v1415_v44  ;;  %v1433_v49 = vand.u32 2147483648, %v1406_v41  ;;  %v1431_v51 = vand.u32 2147483647, %v1406_v41 }
 0x31f   : > { %1439 = vrot.lane.b32.xlu2 %v1420_v45, %s2973_s27  ;;  %vm1427_vm7 = vweird.f32 %v1406_v41  ;;  %2573 = vtanh.f32 %v1395_v20 }
 0x320   : > { %v1434_v52 = vor.u32 1.1754944e-38, %v1433_v49  ;;  %vm1432_vm9 = vcmp.eq.f32.partialorder %v1431_v51, 8.507059e+37  ;;  %2575 = vtanh.f32 %v1396_v30 }
 0x324   : > { %v2572_v46 = vpop.eup %2571 }
 0x325   : > { %v1423_v47 = vmul.f32 %v2572_v46, %v1406_v41  ;;  %vm1428_vm6 = vweird.f32 %v2572_v46  ;;  %v2574_v56 = vpop.eup %2573 }
 0x326   : > { %vm1429_vm8 = vmor %vm1427_vm7, %vm1428_vm6  ;;  %v2576_v59 = vpop.eup %2575 }
 0x327   : > { %v1424_v48 = vsub.f32 1.0, %v1423_v47  ;;  %1528 = vrot.lane.b32.xlu2 %v1492_v58, %s2971_s3 }
 0x329   : > { %v1425_v50 = vmul.f32 %v2572_v46, %v1424_v48 }
 0x32b   : > { %v1426_v27 = vadd.f32 %v2572_v46, %v1425_v50 }
 0x32d   : > { %v1430_v53 = vsel %vm1429_vm8, %v2572_v46, %v1426_v27 }
 0x32e   : > { %v1435_v34 = vsel %vm1432_vm9, %v1434_v52, %v1430_v53  ;;  %v1690_v53 = vld [vmem:[%s3484_s13] sm:$0xff] }
 0x32f   : > { %1441 = vrot.lane.b32.xlu0 %v1435_v34, %s2973_s27  ;;  %1746 = vrot.lane.b32.xlu2 %v1690_v53, %s2970_s2 }
 0x330   : > { %1709 = vmatpush.msrb.mxu0 %v1690_v53 }
 0x379   : > { %v1440_v43 = vpop.permute.xlu2 %1439 }
 0x37a   : > { %v1445_v57 = vmul.f32 %v2574_v56, %v1440_v43 }
 0x37c   : > { %2361 = vmatmul.msk.f32.vlgmr.msrb.gmra.mxu3 %vm948_vm0, %v1445_v57 }
 0x381   : > { %v1529_v61 = vpop.permute.xlu2 %1528 }
 0x382   : > { %1552 = vmatpush.msra.mxu1 %v1529_v61 }
 0x3a1   : > { %v1442_v55 = vpop.permute.xlu0 %1441 }
 0x3a2   : > { %v1446_v60 = vmul.f32 %v2576_v59, %v1442_v55  ;;  %v1747_v59 = vpop.permute.xlu2 %1746 }
 0x3a3   : > { %1767 = vmatpush.msrb.mxu2 %v1747_v59 }
 0x3a4   : > { %2362 = vmatmul.msk.f32.gmra.mxu3 %vm948_vm0, %v1446_v60  ;;  %v2533_v60 = vld [vmem:[#allocation11] ss:$0 sm:$0xff] }
 0x3ff   : > { %v1475_v0 = vpop.f32.mrf.mxu3 }
 0x400   : > { %v1476_v2 = vadd.f32 %v2531_v63, %v1475_v0 }
 0x402   : > { %1481 = vst.msk [vmem:[#allocation2 + $0x8] sm:$0xff] %vm948_vm0, %v1476_v2 }
 0x409   : > { %v1485_v3 = vld [vmem:[#allocation2 + $0x7] sm:$0xff] }
 0x40a   : > { %v3358_v4 = vld [vmem:[#allocation2 + $0x8] sm:$0xff]  ;;  %2363 = vmatmul.msk.f32.vlgmr.msra.gmra.mxu0 %vm948_vm0, %v1485_v3 }
 0x40b   : > { %2365 = vmatmul.msk.f32.vlgmr.msra.gmra.mxu1 %vm948_vm0, %v3358_v4 }
 0x427   : > { %v1478_v5 = vpop.f32.mrf.mxu3 }
 0x428   : > { %v1479_v12 = vadd.f32 %v2531_v63, %v1478_v5  ;;  %v1680_v63 = vmul.f32 0.70710677, %v3358_v4  ;;  %v2534_v4 = vld [vmem:[#allocation12] ss:$0 sm:$0xff] }
 0x42a   : > { %1482 = vst.msk [vmem:[#allocation2 + $0x10] sm:$0xff] %vm948_vm0, %v1479_v12 }
 0x431   : > { %v1486_v15 = vld [vmem:[#allocation2 + $0xf] sm:$0xff] }
 0x432   : > { %v3364_v6 = vld [vmem:[#allocation2 + $0x10] sm:$0xff]  ;;  %2364 = vmatmul.msk.f32.gmra.mxu0 %vm948_vm0, %v1486_v15 }
 0x433   : > { %v1489_v7 = vld [vmem:[#allocation2 + $0x9] sm:$0xff]  ;;  %2366 = vmatmul.msk.f32.gmra.mxu1 %vm948_vm0, %v3364_v6  ;;  %v1490_v8 = vld [vmem:[#allocation2 + $0x11] sm:$0xff]  ;;  %v1681_v3 = vmul.f32 0.70710677, %v3364_v6 }
 0x434   : > { %2367 = vmatmul.msk.f32.vlgmr.msra.gmra.mxu2 %vm948_vm0, %v1489_v7 }
 0x43c   : > { %2368 = vmatmul.msk.f32.gmra.mxu2 %vm948_vm0, %v1490_v8 }
 0x487   : > { %v1516_v9 = vpop.f32.mrf.mxu0 }
 0x488   : > { %v1525_v10 = vadd.f32 %v2532_v17, %v1516_v9  ;;  %v1554_v19 = vpop.f32.mrf.mxu1 }
 0x48a   : > { %v1560_v11 = vadd.f32 %v1554_v19, %v1525_v10  ;;  %v1798_v19 = vld [vmem:[%s3486_s15] sm:$0xff] }
 0x48b   : > { %1821 = vmatpush.msrb.mxu3 %v1798_v19 }
 0x4af   : > { %v1519_v13 = vpop.f32.mrf.mxu0 }
 0x4b0   : > { %v1526_v18 = vadd.f32 %v2532_v17, %v1519_v13  ;;  %v1557_v21 = vpop.f32.mrf.mxu1 }
 0x4b2   : > { %v1561_v22 = vadd.f32 %v1557_v21, %v1526_v18 }
 0x4b7   : > { %v1588_v14 = vpop.f32.mrf.mxu2 }
 0x4b8   : > { %v1594_v16 = vadd.f32 %v1588_v14, %v1560_v11 }
 0x4ba   : > { %v2369_v20 = vmul.f32 -1.442695, %v1594_v16 }
 0x4bc   : > { %2577 = vpow2.f32 %v2369_v20 }
 0x4bf   : > { %v1591_v24 = vpop.f32.mrf.mxu2 }
 0x4c0   : > { %v1595_v25 = vadd.f32 %v1591_v24, %v1561_v22 }
 0x4c2   : > { %v2578_v26 = vpop.eup %2577  ;;  %v2370_v28 = vmul.f32 -1.442695, %v1595_v25 }
 0x4c3   : > { %v1604_v29 = vadd.f32 1.0, %v2578_v26 }
 0x4c4   : > { %2579 = vpow2.f32 %v2370_v28 }
 0x4c5   : > { %2581 = vrcp.f32 %v1604_v29  ;;  %v1617_v36 = vand.u32 2147483648, %v1604_v29  ;;  %v1615_v38 = vand.u32 2147483647, %v1604_v29  ;;  %vm1611_vm11 = vweird.f32 %v1604_v29 }
 0x4c7   : > { %v1618_v41 = vor.u32 1.1754944e-38, %v1617_v36  ;;  %vm1616_vm13 = vcmp.eq.f32.partialorder %v1615_v38, 8.507059e+37 }
 0x4ca   : > { %v2580_v30 = vpop.eup %2579 }
 0x4cb   : > { %v2582_v31 = vpop.eup %2581  ;;  %v1605_v32 = vadd.f32 1.0, %v2580_v30  ;;  %v1832_v30 = vld [vmem:[%s3488_s17] sm:$0xff] }
 0x4cc   : > { %v1607_v33 = vmul.f32 %v2582_v31, %v1604_v29  ;;  %vm1612_vm10 = vweird.f32 %v2582_v31  ;;  %1888 = vrot.lane.b32.xlu2 %v1832_v30, %s2970_s2  ;;  %1851 = vmatpush.msra.mxu0 %v1832_v30 }
 0x4cd   : > { %2583 = vrcp.f32 %v1605_v32  ;;  %vm1613_vm12 = vmor %vm1611_vm11, %vm1612_vm10  ;;  %v1632_v47 = vand.u32 2147483648, %v1605_v32  ;;  %v1630_v49 = vand.u32 2147483647, %v1605_v32  ;;  %vm1626_vm15 = vweird.f32 %v1605_v32 }
 0x4ce   : > { %v1608_v35 = vsub.f32 1.0, %v1607_v33  ;;  %2585 = vtanh.f32 %v1594_v16 }
 0x4cf   : > { %v1633_v51 = vor.u32 1.1754944e-38, %v1632_v47  ;;  %vm1631_vm2 = vcmp.eq.f32.partialorder %v1630_v49, 8.507059e+37  ;;  %2587 = vtanh.f32 %v1595_v25  ;;  %v1940_v49 = vld [vmem:[%s3490_s19] sm:$0xff] }
 0x4d0   : > { %v1609_v37 = vmul.f32 %v2582_v31, %v1608_v35 }
 0x4d2   : > { %v1610_v39 = vadd.f32 %v2582_v31, %v1609_v37  ;;  %v2535_v37 = vld [vmem:[#allocation14] ss:$0 sm:$0xff] }
 0x4d3   : > { %v2584_v40 = vpop.eup %2583 }
 0x4d4   : > { %v1614_v42 = vsel %vm1613_vm12, %v2582_v31, %v1610_v39  ;;  %v1622_v44 = vmul.f32 %v2584_v40, %v1605_v32  ;;  %vm1627_vm14 = vweird.f32 %v2584_v40  ;;  %v2586_v34 = vpop.eup %2585 }
 0x4d5   : > { %v1619_v45 = vsel %vm1616_vm13, %v1618_v41, %v1614_v42  ;;  %vm1628_vm1 = vmor %vm1626_vm15, %vm1627_vm14  ;;  %v2588_v43 = vpop.eup %2587  ;;  %vm2143_vm15 = vcmask 130048  }
 0x4d6   : > { %1638 = vrot.lane.b32.xlu0 %v1619_v45, %s2973_s27  ;;  %v1623_v46 = vsub.f32 1.0, %v1622_v44  ;;  %v2536_v44 = vld [vmem:[#allocation15] ss:$0 sm:$0xff] }
 0x4d8   : > { %v1624_v48 = vmul.f32 %v2584_v40, %v1623_v46 }
 0x4da   : > { %v1625_v50 = vadd.f32 %v2584_v40, %v1624_v48 }
 0x4dc   : > { %v1629_v27 = vsel %vm1628_vm1, %v2584_v40, %v1625_v50 }
 0x4dd   : > { %v1634_v52 = vsel %vm1631_vm2, %v1633_v51, %v1629_v27 }
 0x4de   : > { %1640 = vrot.lane.b32.xlu1 %v1634_v52, %s2973_s27  ;;  %1719 = vrot.lane.b32.xlu0 %v1690_v53, %s2971_s3 }
 0x4e6   : > { %1861 = vrot.lane.b32.xlu0 %v1832_v30, %s2971_s3 }
 0x526   : > { %v1889_v35 = vpop.permute.xlu2 %1888 }
 0x527   : > { %1909 = vmatpush.msra.mxu2 %v1889_v35 }
 0x548   : > { %v1639_v54 = vpop.permute.xlu0 %1638 }
 0x549   : > { %v1644_v56 = vmul.f32 %v2586_v34, %v1639_v54 }
 0x54b   : > { %2371 = vmatmul.msk.f32.vlgmr.msra.gmra.mxu3 %vm948_vm0, %v1644_v56 }
 0x54c   : > { %1963 = vmatpush.msra.mxu3 %v1940_v49 }
 0x550   : > { %v1641_v57 = vpop.permute.xlu1 %1640  ;;  %v1720_v55 = vpop.permute.xlu0 %1719 }
 0x551   : > { %v1645_v58 = vmul.f32 %v2588_v43, %v1641_v57  ;;  %1740 = vmatpush.msrb.mxu1 %v1720_v55 }
 0x553   : > { %2372 = vmatmul.msk.f32.gmra.mxu3 %vm948_vm0, %v1645_v58 }
 0x558   : > { %v1862_v36 = vpop.permute.xlu0 %1861 }
 0x559   : > { %1882 = vmatpush.msra.mxu1 %v1862_v36 }
 0x5ce   : > { %v1674_v61 = vpop.f32.mrf.mxu3 }
 0x5cf   : > { %v1675_v62 = vadd.f32 %v2533_v60, %v1674_v61 }
 0x5d1   : > { %v1682_v0 = vadd.f32 %v1680_v63, %v1675_v62  ;;  %v1975_v62 = vld [vmem:[%s3492_s21] sm:$0xff] }
 0x5d2   : > { %2004 = vrot.lane.b32.xlu0 %v1975_v62, %s2971_s3  ;;  %2031 = vrot.lane.b32.xlu2 %v1975_v62, %s2970_s2 }
 0x5d3   : > { %1684 = vst.msk [vmem:[#allocation2 + $0x8] sm:$0xff] %vm948_vm0, %v1682_v0 }
 0x5d6   : > { %v1677_v2 = vpop.f32.mrf.mxu3 }
 0x5d7   : > { %v1678_v5 = vadd.f32 %v2533_v60, %v1677_v2 }
 0x5d9   : > { %v1683_v12 = vadd.f32 %v1681_v3, %v1678_v5 }
 0x5db   : > { %1685 = vst.msk [vmem:[#allocation2 + $0x10] sm:$0xff] %vm948_vm0, %v1683_v12  ;;  %v2537_v12 = vld [vmem:[%s3491_s20] ss:$0 sm:$0xff] }
 0x5e2   : > { %v1686_v15 = vld [vmem:[#allocation2 + $0x7] ss:$2 sm:$0xff]  ;;  %v1687_v7 = vld [vmem:[#allocation2 + $0x8] ss:$2 sm:$0xff] }
 0x5e3   : > { %v1688_v8 = vld [vmem:[#allocation2 + $0x9] ss:$2 sm:$0xff]  ;;  %2373 = vmatmul.msk.f32.vlgmr.msrb.gmra.mxu0 %vm948_vm0, %v1686_v15  ;;  %2374 = vmatmul.msk.f32.vlgmr.msrb.gmra.mxu1 %vm948_vm0, %v1687_v7 }
 0x5e4   : > { %1827 = vst.msk [vmem:[#allocation2 + $0x10] sm:$0xff] %vm948_vm0, %v2972_v1  ;;  %2375 = vmatmul.msk.f32.vlgmr.msrb.gmra.mxu2 %vm948_vm0, %v1688_v8  ;;  %1994 = vmatpush.msrb.mxu0 %v1975_v62 }
 0x62c   : > { %v2032_v3 = vpop.permute.xlu2 %2031 }
 0x62d   : > { %2052 = vmatpush.msrb.mxu2 %v2032_v3 }
 0x644   : > { %v2005_v5 = vpop.permute.xlu0 %2004 }
 0x645   : > { %2025 = vmatpush.msrb.mxu1 %v2005_v5 }
 0x660   : > { %v1711_v17 = vpop.f32.mrf.mxu0  ;;  %v1742_v6 = vpop.f32.mrf.mxu1 }
 0x661   : > { %v1717_v9 = vadd.f32 %v2534_v4, %v1711_v17 }
 0x663   : > { %v1745_v10 = vadd.f32 %v1742_v6, %v1717_v9 }
 0x667   : > { %v1769_v11 = vpop.f32.mrf.mxu2 }
 0x668   : > { %v1772_v13 = vadd.f32 %v1769_v11, %v1745_v10  ;;  %v2538_v10 = vld [vmem:[%s3493_s22] ss:$0 sm:$0xff] }
 0x66a   : > { %v2376_v14 = vmul.f32 -1.442695, %v1772_v13 }
 0x66c   : > { %2589 = vpow2.f32 %v2376_v14 }
 0x672   : > { %v2590_v16 = vpop.eup %2589 }
 0x673   : > { %v1777_v18 = vadd.f32 1.0, %v2590_v16  ;;  %v2083_v16 = vld [vmem:[%s3494_s23] sm:$0xff] }
 0x675   : > { %2591 = vrcp.f32 %v1777_v18  ;;  %v1789_v22 = vand.u32 2147483648, %v1777_v18  ;;  %v1787_v24 = vand.u32 2147483647, %v1777_v18  ;;  %vm1783_vm4 = vweird.f32 %v1777_v18 }
 0x676   : > { %2593 = vtanh.f32 %v1772_v13 }
 0x677   : > { %v1790_v26 = vor.u32 1.1754944e-38, %v1789_v22  ;;  %vm1788_vm6 = vcmp.eq.f32.partialorder %v1787_v24, 8.507059e+37 }
 0x67b   : > { %v2592_v1 = vpop.eup %2591 }
 0x67c   : > { %v1779_v20 = vmul.f32 %v2592_v1, %v1777_v18  ;;  %vm1784_vm3 = vweird.f32 %v2592_v1  ;;  %v2594_v31 = vpop.eup %2593 }
 0x67d   : > { %vm1785_vm5 = vmor %vm1783_vm4, %vm1784_vm3 }
 0x67e   : > { %v1780_v21 = vsub.f32 1.0, %v1779_v20 }
 0x680   : > { %v1781_v23 = vmul.f32 %v2592_v1, %v1780_v21 }
 0x682   : > { %v1782_v25 = vadd.f32 %v2592_v1, %v1781_v23 }
 0x684   : > { %v1786_v28 = vsel %vm1785_vm5, %v2592_v1, %v1782_v25 }
 0x685   : > { %v1791_v29 = vsel %vm1788_vm6, %v1790_v26, %v1786_v28 }
 0x686   : > { %1794 = vrot.lane.b32.xlu1 %v1791_v29, %s2973_s27 }
 0x6f8   : > { %v1795_v32 = vpop.permute.xlu1 %1794 }
 0x6f9   : > { %v1797_v33 = vmul.f32 %v2594_v31, %v1795_v32 }
 0x6fb   : > { %2377 = vmatmul.msk.f32.vlgmr.msrb.gmra.mxu3 %vm948_vm0, %v1797_v33 }
 0x6fc   : > { %2106 = vmatpush.msrb.mxu3 %v2083_v16 }
 0x77e   : > { %v1823_v38 = vpop.f32.mrf.mxu3 }
 0x77f   : > { %v1824_v39 = vadd.f32 %v2535_v37, %v1823_v38  ;;  %v2115_v38 = vld [vmem:[#allocation17] sm:$0xff] }
 0x781   : > { %1826 = vst.msk [vmem:[#allocation2 + $0x8] sm:$0xff] %vm948_vm0, %v1824_v39  ;;  %v2539_v39 = vld [vmem:[%s3495_s24] ss:$0 sm:$0xff] }
 0x788   : > { %v1828_v40 = vld [vmem:[#allocation2 + $0x6] sm:$0xff] }
 0x789   : > { %v1829_v41 = vld [vmem:[#allocation2 + $0x8] sm:$0xff]  ;;  %2378 = vmatmul.msk.f32.vlgmr.msra.gmra.mxu0 %vm948_vm0, %v1828_v40 }
 0x78a   : > { %v1830_v42 = vld [vmem:[#allocation2 + $0xa] sm:$0xff]  ;;  %2379 = vmatmul.msk.f32.vlgmr.msra.gmra.mxu1 %vm948_vm0, %v1829_v41  ;;  %v1968_v8 = vmul.f32 0.70710677, %v1829_v41  ;;  %2138 = vmatpush.msra.mxu0 %v2115_v38 }
 0x78b   : > { %2380 = vmatmul.msk.f32.vlgmr.msra.gmra.mxu2 %vm948_vm0, %v1830_v42 }
 0x806   : > { %v1853_v45 = vpop.f32.mrf.mxu0 }
 0x807   : > { %v1859_v46 = vadd.f32 %v2536_v44, %v1853_v45  ;;  %v1884_v47 = vpop.f32.mrf.mxu1 }
 0x809   : > { %v1887_v48 = vadd.f32 %v1884_v47, %v1859_v46  ;;  %v2540_v46 = vld [vmem:[%s3550_s0] ss:$0 sm:$0xff] }
 0x80e   : > { %v1911_v50 = vpop.f32.mrf.mxu2 }
 0x80f   : > { %v1914_v51 = vadd.f32 %v1911_v50, %v1887_v48 }
 0x811   : > { %v2381_v27 = vmul.f32 -1.442695, %v1914_v51 }
 0x813   : > { %2595 = vpow2.f32 %v2381_v27 }
 0x819   : > { %v2596_v52 = vpop.eup %2595 }
 0x81a   : > { %v1919_v53 = vadd.f32 1.0, %v2596_v52 }
 0x81c   : > { %2597 = vrcp.f32 %v1919_v53  ;;  %v1931_v43 = vand.u32 2147483648, %v1919_v53  ;;  %v1929_v58 = vand.u32 2147483647, %v1919_v53  ;;  %vm1925_vm8 = vweird.f32 %v1919_v53 }
 0x81d   : > { %2599 = vtanh.f32 %v1914_v51 }
 0x81e   : > { %v1932_v55 = vor.u32 1.1754944e-38, %v1931_v43  ;;  %vm1930_vm10 = vcmp.eq.f32.partialorder %v1929_v58, 8.507059e+37 }
 0x822   : > { %v2598_v34 = vpop.eup %2597 }
 0x823   : > { %v1921_v54 = vmul.f32 %v2598_v34, %v1919_v53  ;;  %vm1926_vm7 = vweird.f32 %v2598_v34  ;;  %v2600_v63 = vpop.eup %2599 }
 0x824   : > { %vm1927_vm9 = vmor %vm1925_vm8, %vm1926_vm7 }
 0x825   : > { %v1922_v56 = vsub.f32 1.0, %v1921_v54 }
 0x827   : > { %v1923_v57 = vmul.f32 %v2598_v34, %v1922_v56 }
 0x829   : > { %v1924_v59 = vadd.f32 %v2598_v34, %v1923_v57 }
 0x82b   : > { %v1928_v60 = vsel %vm1927_vm9, %v2598_v34, %v1924_v59 }
 0x82c   : > { %v1933_v61 = vsel %vm1930_vm10, %v1932_v55, %v1928_v60 }
 0x82d   : > { %1936 = vrot.lane.b32.xlu1 %v1933_v61, %s2973_s27 }
 0x89f   : > { %v1937_v0 = vpop.permute.xlu1 %1936 }
 0x8a0   : > { %v1939_v2 = vmul.f32 %v2600_v63, %v1937_v0 }
 0x8a2   : > { %2382 = vmatmul.msk.f32.vlgmr.msra.gmra.mxu3 %vm948_vm0, %v1939_v2 }
 0x925   : > { %v1965_v15 = vpop.f32.mrf.mxu3 }
 0x926   : > { %v1966_v7 = vadd.f32 %v2537_v12, %v1965_v15 }
 0x928   : > { %v1969_v4 = vadd.f32 %v1968_v8, %v1966_v7 }
 0x92a   : > { %1970 = vst.msk [vmem:[#allocation2 + $0x8] sm:$0xff] %vm948_vm0, %v1969_v4 }
 0x931   : > { %v1971_v17 = vld [vmem:[#allocation2 + $0x4] sm:$0xff]  ;;  %v1973_v6 = vld [vmem:[#allocation2 + $0xc] sm:$0xff] }
 0x932   : > { %v1972_v9 = vld [vmem:[#allocation2 + $0x8] sm:$0xff]  ;;  %2383 = vmatmul.msk.f32.vlgmr.msrb.gmra.mxu0 %vm948_vm0, %v1971_v17  ;;  %2385 = vmatmul.msk.f32.vlgmr.msrb.gmra.mxu2 %vm948_vm0, %v1973_v6 }
 0x933   : > { %2384 = vmatmul.msk.f32.vlgmr.msrb.gmra.mxu1 %vm948_vm0, %v1972_v9  ;;  %v2111_v42 = vmul.f32 0.70710677, %v1972_v9 }
 0x9af   : > { %v1996_v19 = vpop.f32.mrf.mxu0 }
 0x9b0   : > { %v2002_v11 = vadd.f32 %v2538_v10, %v1996_v19  ;;  %v2027_v13 = vpop.f32.mrf.mxu1 }
 0x9b2   : > { %v2030_v14 = vadd.f32 %v2027_v13, %v2002_v11 }
 0x9b5   : > { %v2054_v18 = vpop.f32.mrf.mxu2 }
 0x9b6   : > { %v2057_v1 = vadd.f32 %v2054_v18, %v2030_v14 }
 0x9b8   : > { %v2386_v20 = vmul.f32 -1.442695, %v2057_v1 }
 0x9ba   : > { %2601 = vpow2.f32 %v2386_v20 }
 0x9c0   : > { %v2602_v21 = vpop.eup %2601 }
 0x9c1   : > { %v2062_v22 = vadd.f32 1.0, %v2602_v21 }
 0x9c3   : > { %2603 = vrcp.f32 %v2062_v22  ;;  %v2074_v26 = vand.u32 2147483648, %v2062_v22  ;;  %v2072_v29 = vand.u32 2147483647, %v2062_v22  ;;  %vm2068_vm12 = vweird.f32 %v2062_v22 }
 0x9c4   : > { %2605 = vtanh.f32 %v2057_v1 }
 0x9c5   : > { %v2075_v31 = vor.u32 1.1754944e-38, %v2074_v26  ;;  %vm2073_vm14 = vcmp.eq.f32.partialorder %v2072_v29, 8.507059e+37 }
 0x9c9   : > { %v2604_v23 = vpop.eup %2603 }
 0x9ca   : > { %v2064_v24 = vmul.f32 %v2604_v23, %v2062_v22  ;;  %vm2069_vm11 = vweird.f32 %v2604_v23  ;;  %v2606_v35 = vpop.eup %2605 }
 0x9cb   : > { %vm2070_vm13 = vmor %vm2068_vm12, %vm2069_vm11 }
 0x9cc   : > { %v2065_v25 = vsub.f32 1.0, %v2064_v24 }
 0x9ce   : > { %v2066_v28 = vmul.f32 %v2604_v23, %v2065_v25 }
 0x9d0   : > { %v2067_v30 = vadd.f32 %v2604_v23, %v2066_v28 }
 0x9d2   : > { %v2071_v32 = vsel %vm2070_vm13, %v2604_v23, %v2067_v30 }
 0x9d3   : > { %v2076_v33 = vsel %vm2073_vm14, %v2075_v31, %v2071_v32 }
 0x9d4   : > { %2079 = vrot.lane.b32.xlu1 %v2076_v33, %s2973_s27  ;;  %s940_s27 = sand.u32 1, %s2951_s4  }
 0x9d5   : > { %s2330_s11 = sshll.u32 %s940_s27, 3  ;;  %s2146_s28 = scalar_lea.sflag [#allocation5], %s940_s27 }
 0x9d6   : > { %s942_s2 = scalar_lea.vmem [#allocation18], %s2330_s11  ;;  %s2897_s11 = scalar_lea.hbm %s3549_s29, 16 }
 0x9d7   : > { %s2158_s3 = sshll.u32 %s942_s2, 4  ;;  %p2899_p4 = scmp.lt.s32.totalorder %s2897_s11, %s2893_s14  ;;  %s2159_s3 = int_to_ptr.vmem [resolvable:$true] %s2158_s3 }
 0x9d9   : > { %p2900_p7 = por %p2899_p4, %p2898_p3 }
 0x9db   : > { %p2901_p8 = pnand %p2900_p7, %p2896_p2 }
 0xa46   : > { %v2080_v36 = vpop.permute.xlu1 %2079 }
 0xa47   : > { %v2082_v37 = vmul.f32 %v2606_v35, %v2080_v36 }
 0xa49   : > { %2387 = vmatmul.msk.f32.vlgmr.msrb.gmra.mxu3 %vm948_vm0, %v2082_v37 }
 0xacc   : > { %v2108_v40 = vpop.f32.mrf.mxu3 }
 0xacd   : > { %v2109_v41 = vadd.f32 %v2539_v39, %v2108_v40 }
 0xacf   : > { %v2112_v44 = vadd.f32 %v2111_v42, %v2109_v41 }
 0xad1   : > { %2113 = vst.msk [vmem:[#allocation2 + $0x8] sm:$0xff] %vm948_vm0, %v2112_v44 }
 0xad8   : > { %v2114_v45 = vld [vmem:[#allocation2 + $0x8] sm:$0xff] }
 0xad9   : > { %2388 = vmatmul.msk.f32.vlgmr.msra.gmra.mxu0 %vm948_vm0, %v2114_v45 }
 0xb56   : > { %v2140_v47 = vpop.f32.mrf.mxu0 }
 0xb57   : > { %v2141_v48 = vadd.f32 %v2540_v46, %v2140_v47 }
 0xb59   : > { %2144 = vst.msk [vmem:[%s942_s2] sm:$0xff] %vm2143_vm15, %v2141_v48 }
 0xb5a   : > { %2904 = shalt.err (!%p2901_p8)
}
 0xb5b   : > { %2430 = dma.vmem_to_hbm [thread:$0]  (%p3152_p5), %s2159_s3, 128, %s2161_s26, %s2146_s28  }
 0xb5c PF: > { %s3552_s27 = sld [smem:[#allocation27_spill]] }
 0xb5d   : > { %s3553_s7 = sld [smem:[#allocation25_spill]] }
 0xb62   : > { %p2482_p9 = scmp.ge.s32.totalorder %s3552_s27, 2 }
 0xb63   : > { %s2172_s18 = sand.u32 1, %s3553_s7  }
 0xb64   : > { %p2461_p10 = pnand %p2482_p9, %p3156_p6  ;;  %s2173_s0 = scalar_lea.sflag [#allocation5], %s2172_s18 }
 0xb66   : > { %p2462_p11 = pneg %p2461_p10 }
 0xb68   : > { %2942 = dma.done.wait (%p2462_p11), %s2173_s0, 128  }
 0xb69   : > { %2944 = vsyncadd (%p2462_p11), %s2173_s0, 4294967168  ;;  %s3555_s30 = sld [smem:[#allocation28_spill]]  ;;  %s3558_s7 = smov %s2951_s4 }
 0xb6a   : > { %s3556_s2 = sld [smem:[#allocation26_spill]] }
 0xb6b   : > { %s3557_s8 = sld [smem:[#allocation29_spill]] }
 0xb6f   : > { %p42_p12 = scmp.ge.s32.totalorder %s3555_s30, 4  }
 0xb70   : > { %s3559_s4 = smov %s3556_s2 }
 0xb71   :  { %44 = sbr.rel (!%p42_p12) target bundleno = 25 (0x19), region = 206 }
 0xb76   :  { %2179 = vsyncpa [#allocation4], 1 }
 0xb77   :  { %2181 = vsyncpa [#allocation4 + $0x1], 1 }
 0xb78   :  { %2182 = vsyncpa [#allocation7], 1 }
 0xb79   :  { %2183 = vsyncpa [#allocation10], 1 }
 0xb7a   :  { %2184 = vsyncpa [#allocation13], 1 }
 0xb7b   :  { %2185 = vsyncpa [#allocation16], 1 }
 0xb7c   :  { %2186 = vsyncpa [#allocation5], 1 }
 0xb7d   :  { %2188 = vsyncpa [#allocation5 + $0x1], 1 }

</bundles_post_ra>
